<compile_context>
chip_gen: v7x
topology: tpu7x:2x2x1
jax: 0.10.0
libtpu: 0.0.40
codegen_flags: <defaults>
</compile_context>

<pallas_src>
import functools

import jax
import jax.numpy as jnp
from jax.experimental import pallas as pl
from jax.experimental.pallas import tpu as pltpu

LN_EPS = 1e-5  # nn.LayerNorm default


def _round_up(x, m):
    return (x + m - 1) // m * m


def _num_tensorcores():
    """Best-effort TensorCore count per device (2 on v4/v5p/v7x, else 1)."""
    try:
        kind = jax.devices()[0].device_kind.lower()
    except Exception:  # pragma: no cover - defensive only
        return 1
    for tag in ("v4", "v5p", "7"):
        if tag in kind:
            return 2
    return 1


# ----------------------------- kernel helpers ------------------------------

def _layer_norm(x, g, b):
    m = jnp.mean(x, axis=-1, keepdims=True)
    v = jnp.mean((x - m) ** 2, axis=-1, keepdims=True)
    return (x - m) * jax.lax.rsqrt(v + LN_EPS) * g + b


# --------------------------------- kernel -----------------------------------

def _latent_encoder_kernel(layout, num_layers, style_size, embed_size,
                           noise_size, out_w, xin_ref, slab_ref, out_ref):
    """Fused LatentEncoder forward for one batch tile.

    layout: tuple of static (row_offset, rows, cols) describing where each
    (already fused) parameter lives inside the packed slab.  Slab order:
      ln1_g, ln1_b,
      per layer: W1||Ws, b1||bs, W2, b2, W3, b3, ln_g, ln_b,
      W_mu||W_var, b_mu||b_var
    xin packs [his | fut | eps | zero-pad] along lanes (width 128).
    """
    f32 = jnp.float32

    def param(idx):
        off, r, c = layout[idx]
        return slab_ref[pl.ds(off, r), pl.ds(0, c)]

    xin = xin_ref[...]
    his = xin[:, :style_size]
    fut = xin[:, style_size:2 * style_size]
    eps = xin[:, 2 * style_size:2 * style_size + noise_size]

    # layer_norm_1(fut_style - his_style)
    x = _layer_norm(fut - his, param(0), param(1))

    idx = 2
    for _ in range(num_layers):
        w1s, b1s, w2, b2, w3, b3, ln_g, ln_b = (param(idx + k) for k in range(8))
        idx += 8
        # fused (fc first linear || shortcut linear): both consume x.
        hs = jnp.dot(x, w1s, preferred_element_type=f32) + b1s     # (tb, 2*embed)
        h = jnp.maximum(hs[:, :embed_size], 0.0)                   # afn='relu'
        sc = hs[:, embed_size:]                                    # shortcut (no act)
        h = jnp.maximum(jnp.dot(h, w2, preferred_element_type=f32) + b2, 0.0)
        h = jnp.dot(h, w3, preferred_element_type=f32) + b3
        x = _layer_norm(h + sc, ln_g, ln_b)                        # trailing LayerNorm

    # fused (mu_fc || var_fc) head.
    w_mv, b_mv = param(idx), param(idx + 1)
    mv = jnp.dot(x, w_mv, preferred_element_type=f32) + b_mv       # (tb, 2*noise)
    mu = mv[:, :noise_size]
    log_var = mv[:, noise_size:]
    z = eps * jnp.exp(0.5 * log_var) + mu                          # reparam sample

    packed = jnp.concatenate([mv, z], axis=-1)                     # (tb, 3*noise)
    pad = out_w - 3 * noise_size
    if pad:
        packed = jnp.concatenate(
            [packed, jnp.zeros((packed.shape[0], pad), f32)], axis=-1)
    out_ref[...] = packed                                          # one dense store


# ------------------------- one-time param packing ----------------------------

def _fuse_params(params, num_latent_fc_layers):
    """Concatenate shared-LHS weight pairs (W1||Ws, mu||var) column-wise."""
    it = iter(params)
    fused = [next(it), next(it)]                                   # ln1_g, ln1_b
    for _ in range(num_latent_fc_layers):
        w1, b1, w2, b2, w3, b3, ws, bs, lg, lb = (next(it) for _ in range(10))
        fused += [jnp.concatenate([w1, ws], axis=1),
                  jnp.concatenate([b1, bs], axis=1),
                  w2, b2, w3, b3, lg, lb]
    mu_w, mu_b, var_w, var_b = (next(it) for _ in range(4))
    fused += [jnp.concatenate([mu_w, var_w], axis=1),
              jnp.concatenate([mu_b, var_b], axis=1)]
    return fused


def _pack_param_slab(fused_params):
    """Pack all params into one (R, 128k) f32 slab; rows padded to 8."""
    width = _round_up(max(int(p.shape[1]) for p in fused_params), 128)
    layout, blocks, row = [], [], 0
    for p in fused_params:
        r, c = int(p.shape[0]), int(p.shape[1])
        rp = _round_up(r, 8)
        blk = jnp.zeros((rp, width), jnp.float32)
        blk = blk.at[:r, :c].set(p.astype(jnp.float32))
        blocks.append(blk)
        layout.append((row, r, c))
        row += rp
    slab = jnp.concatenate(blocks, axis=0)
    return slab, tuple(layout)


# ------------------------------- builder -------------------------------------

def make_latent_encoder(params, num_latent_fc_layers, embed_size, noise_size,
                        *, tb=None):
    """Builds the packed parameter slab ONCE and returns a jitted forward fn.

    params: flat list of 2-D arrays (ln1_g, ln1_b, per-layer ResNet block
    params, mu/var head) exactly as produced by init_params.
    """
    style_size = int(params[0].shape[1])
    fused = _fuse_params(params, num_latent_fc_layers)
    slab, layout = _pack_param_slab(fused)
    slab = jax.device_put(slab)

    weight_mac = sum(int(p.shape[0]) * int(p.shape[1])
                     for p in fused if int(p.shape[0]) > 1)

    n_cores = _num_tensorcores()
    in_w = _round_up(2 * style_size + noise_size, 128)   # his|fut|eps packed
    out_w = _round_up(3 * noise_size, 128)               # mu|log_var|z packed

    @jax.jit
    def forward(his_style, fut_style, eps):
        B = his_style.shape[0]

        tile = tb
        if tile is None:
            # One grid step on single-TC chips (v5e/v6e); exactly two
            # "parallel" steps on 2-TC chips (v7x / v4 / v5p).  Per-step
            # footprint is <1 MiB at these widths so VMEM never constrains.
            tile = B
            if n_cores >= 2 and B % 2 == 0 and (B // 2) % 8 == 0:
                tile = B // 2
        assert B % tile == 0 and (tile % 8 == 0 or tile == B), (B, tile)

        # Single lane-dense input slab (fuses into one copy under jit).
        xin = jnp.concatenate([his_style.astype(jnp.float32),
                               fut_style.astype(jnp.float32),
                               eps.astype(jnp.float32)], axis=-1)
        pad = in_w - xin.shape[1]
        if pad:
            xin = jnp.pad(xin, ((0, 0), (0, pad)))

        kernel = functools.partial(
            _latent_encoder_kernel, layout, num_latent_fc_layers,
            style_size, embed_size, noise_size, out_w)

        cost = pl.CostEstimate(
            flops=2 * B * weight_mac,
            transcendentals=B * (num_latent_fc_layers + 1 + noise_size),
            bytes_accessed=4 * (B * in_w + B * out_w + int(slab.size)))

        packed = pl.pallas_call(
            kernel,
            out_shape=jax.ShapeDtypeStruct((B, out_w), jnp.float32),
            grid_spec=pltpu.PrefetchScalarGridSpec(
                num_scalar_prefetch=0,
                grid=(B // tile,),
                in_specs=[pl.BlockSpec((tile, in_w), lambda i: (i, 0)),
                          # single VMEM-resident parameter slab; constant block
                          # index -> fetched once, one DMA stream.
                          pl.BlockSpec(slab.shape, lambda i: (0, 0))],
                out_specs=pl.BlockSpec((tile, out_w), lambda i: (i, 0)),
            ),
            compiler_params=pltpu.CompilerParams(
                dimension_semantics=("parallel",)),
            cost_estimate=cost,
        )(xin, slab)

        mu = packed[:, :noise_size]
        log_var = packed[:, noise_size:2 * noise_size]
        z = packed[:, 2 * noise_size:3 * noise_size]
        return mu, log_var, z

    return forward


# ------------------------- deterministic param init -------------------------

def init_params(key, embed_size, noise_size, content_dim, num_latent_fc_layers):
    style_size = embed_size - content_dim

    def linear(key, fan_in, fan_out):
        kw, kb = jax.random.split(key)
        bound = 1.0 / jnp.sqrt(fan_in)
        w = jax.random.uniform(kw, (fan_in, fan_out), jnp.float32, -bound, bound)
        b = jax.random.uniform(kb, (1, fan_out), jnp.float32, -bound, bound)
        return w, b

    def layernorm(dim):
        # nn.LayerNorm default: weight=1, bias=0
        return jnp.ones((1, dim), jnp.float32), jnp.zeros((1, dim), jnp.float32)

    params = []
    g, b = layernorm(style_size)
    params += [g, b]

    in_dim = style_size
    keys = jax.random.split(key, num_latent_fc_layers * 4 + 2)
    ki = 0
    for _ in range(num_latent_fc_layers):
        w1, b1 = linear(keys[ki], in_dim, embed_size); ki += 1
        w2, b2 = linear(keys[ki], embed_size, embed_size // 2); ki += 1
        w3, b3 = linear(keys[ki], embed_size // 2, embed_size); ki += 1
        ws, bs = linear(keys[ki], in_dim, embed_size); ki += 1
        lg, lb = layernorm(embed_size)
        params += [w1, b1, w2, b2, w3, b3, ws, bs, lg, lb]
        in_dim = embed_size

    mu_w, mu_b = linear(keys[ki], embed_size, noise_size); ki += 1
    var_w, var_b = linear(keys[ki], embed_size, noise_size); ki += 1
    params += [mu_w, mu_b, var_w, var_b]
    return params


# --------------------------- pure-JAX reference ------------------------------

def reference_forward(his, fut, eps, params, num_latent_fc_layers):
    def ln(x, g, b):
        m = jnp.mean(x, -1, keepdims=True)
        v = jnp.mean((x - m) ** 2, -1, keepdims=True)
        return (x - m) / jnp.sqrt(v + LN_EPS) * g + b

    it = iter(params)
    ln1_g, ln1_b = next(it), next(it)
    x = ln(fut - his, ln1_g, ln1_b)
    for _ in range(num_latent_fc_layers):
        w1, b1, w2, b2, w3, b3, ws, bs, lg, lb = (next(it) for _ in range(10))
        h = jnp.maximum(x @ w1 + b1, 0.0)
        h = jnp.maximum(h @ w2 + b2, 0.0)
        h = h @ w3 + b3
        x = ln(h + (x @ ws + bs), lg, lb)
    mu_w, mu_b, var_w, var_b = next(it), next(it), next(it), next(it)
    mu = x @ mu_w + mu_b
    log_var = x @ var_w + var_b
    z = eps * jnp.exp(0.5 * log_var) + mu
    return mu, log_var, z


# --------------------------------- main --------------------------------------

if __name__ == "__main__":
    embed_size = 32
    content_dim = 8
    noise_size = 16
    num_latent_fc_layers = 2
    style_size = embed_size - content_dim
    batch = 64

    key = jax.random.PRNGKey(0)
    k_his, k_fut, k_eps, k_par = jax.random.split(key, 4)

    his_style = jax.random.normal(k_his, (batch, style_size), jnp.float32)
    fut_style = jax.random.normal(k_fut, (batch, style_size), jnp.float32)
    # torch.randn_like(std) equivalent: standard-normal noise supplied as an
    # input so the kernel is deterministic.
    eps = jax.random.normal(k_eps, (batch, noise_size), jnp.float32)

    params = init_params(k_par, embed_size, noise_size, content_dim,
                         num_latent_fc_layers)

    # One-time build (param slab packed here, not per call).
    encoder = make_latent_encoder(params, num_latent_fc_layers,
                                  embed_size, noise_size)

    mu, log_var, z = encoder(his_style, fut_style, eps)
    jax.block_until_ready((mu, log_var, z))

    mu_r, lv_r, z_r = reference_forward(his_style, fut_style, eps, params,
                                        num_latent_fc_layers)
    assert jnp.allclose(mu, mu_r, atol=1e-4, rtol=1e-4), \
        float(jnp.max(jnp.abs(mu - mu_r)))
    assert jnp.allclose(log_var, lv_r, atol=1e-4, rtol=1e-4), \
        float(jnp.max(jnp.abs(log_var - lv_r)))
    assert jnp.allclose(z, z_r, atol=1e-4, rtol=1e-4), \
        float(jnp.max(jnp.abs(z - z_r)))

    print("KERNEL_OK")
</pallas_src>

<mosaic_0001>
module attributes {stable_mosaic.version = 11 : i64} {
  func.func @_latent_encoder_kernel(%arg0: i32, %arg1: memref<64x128xf32, #tpu.memory_space<vmem>>, %arg2: memref<288x128xf32, #tpu.memory_space<vmem>>, %arg3: memref<64x128xf32, #tpu.memory_space<vmem>>) attributes {dimension_semantics = [#tpu.dimension_semantics<parallel>], iteration_bounds = array<i64: 1>, scalar_prefetch = 0 : i64, scratch_operands = 0 : i64, tpu.core_type = #tpu.core_type<tc>, window_params = [{transform_indices = @transform_0, window_bounds = array<i64: 64, 128>}, {pipeline_mode = #tpu.pipeline_mode<synchronous>, transform_indices = @transform_1, window_bounds = array<i64: 288, 128>}, {transform_indices = @transform_2, window_bounds = array<i64: 64, 128>}]} {
    %c0 = arith.constant 0 : index
    %c0_0 = arith.constant 0 : index
    %0 = vector.load %arg1[%c0, %c0_0] : memref<64x128xf32, #tpu.memory_space<vmem>>, vector<64x128xf32>
    %1 = vector.extract_strided_slice %0 {offsets = [0, 0], sizes = [64, 24], strides = [1, 1]} : vector<64x128xf32> to vector<64x24xf32>
    %2 = vector.extract_strided_slice %0 {offsets = [0, 24], sizes = [64, 24], strides = [1, 1]} : vector<64x128xf32> to vector<64x24xf32>
    %3 = vector.extract_strided_slice %0 {offsets = [0, 48], sizes = [64, 16], strides = [1, 1]} : vector<64x128xf32> to vector<64x16xf32>
    %4 = arith.subf %2, %1 : vector<64x24xf32>
    %c0_1 = arith.constant 0 : index
    %c0_2 = arith.constant 0 : index
    %5 = vector.load %arg2[%c0_1, %c0_2] : memref<288x128xf32, #tpu.memory_space<vmem>>, vector<1x24xf32>
    %c8 = arith.constant 8 : index
    %c0_3 = arith.constant 0 : index
    %6 = vector.load %arg2[%c8, %c0_3] : memref<288x128xf32, #tpu.memory_space<vmem>>, vector<1x24xf32>
    %cst = arith.constant dense<0.000000e+00> : vector<64xf32>
    %7 = vector.multi_reduction <add>, %4, %cst [1] : vector<64x24xf32> to vector<64xf32>
    %8 = vector.shape_cast %7 : vector<64xf32> to vector<64x1xf32>
    %cst_4 = arith.constant 2.400000e+01 : f32
    %9 = vector.broadcast %cst_4 : f32 to vector<64x1xf32>
    %10 = arith.divf %8, %9 : vector<64x1xf32>
    %11 = vector.broadcast %10 : vector<64x1xf32> to vector<64x24xf32>
    %12 = arith.subf %4, %11 : vector<64x24xf32>
    %13 = arith.mulf %12, %12 : vector<64x24xf32>
    %cst_5 = arith.constant dense<0.000000e+00> : vector<64xf32>
    %14 = vector.multi_reduction <add>, %13, %cst_5 [1] : vector<64x24xf32> to vector<64xf32>
    %15 = vector.shape_cast %14 : vector<64xf32> to vector<64x1xf32>
    %cst_6 = arith.constant 2.400000e+01 : f32
    %16 = vector.broadcast %cst_6 : f32 to vector<64x1xf32>
    %17 = arith.divf %15, %16 : vector<64x1xf32>
    %18 = vector.broadcast %10 : vector<64x1xf32> to vector<64x24xf32>
    %19 = arith.subf %4, %18 : vector<64x24xf32>
    %cst_7 = arith.constant 9.99999974E-6 : f32
    %20 = vector.broadcast %cst_7 : f32 to vector<64x1xf32>
    %21 = arith.addf %17, %20 : vector<64x1xf32>
    %22 = math.rsqrt %21 : vector<64x1xf32>
    %23 = vector.broadcast %22 : vector<64x1xf32> to vector<64x24xf32>
    %24 = arith.mulf %19, %23 : vector<64x24xf32>
    %25 = vector.broadcast %5 : vector<1x24xf32> to vector<64x24xf32>
    %26 = arith.mulf %24, %25 : vector<64x24xf32>
    %27 = vector.broadcast %6 : vector<1x24xf32> to vector<64x24xf32>
    %28 = arith.addf %26, %27 : vector<64x24xf32>
    %c16 = arith.constant 16 : index
    %c0_8 = arith.constant 0 : index
    %29 = vector.load %arg2[%c16, %c0_8] : memref<288x128xf32, #tpu.memory_space<vmem>>, vector<24x64xf32>
    %c40 = arith.constant 40 : index
    %c0_9 = arith.constant 0 : index
    %30 = vector.load %arg2[%c40, %c0_9] : memref<288x128xf32, #tpu.memory_space<vmem>>, vector<1x64xf32>
    %c48 = arith.constant 48 : index
    %c0_10 = arith.constant 0 : index
    %31 = vector.load %arg2[%c48, %c0_10] : memref<288x128xf32, #tpu.memory_space<vmem>>, vector<32x16xf32>
    %c80 = arith.constant 80 : index
    %c0_11 = arith.constant 0 : index
    %32 = vector.load %arg2[%c80, %c0_11] : memref<288x128xf32, #tpu.memory_space<vmem>>, vector<1x16xf32>
    %c88 = arith.constant 88 : index
    %c0_12 = arith.constant 0 : index
    %33 = vector.load %arg2[%c88, %c0_12] : memref<288x128xf32, #tpu.memory_space<vmem>>, vector<16x32xf32>
    %c104 = arith.constant 104 : index
    %c0_13 = arith.constant 0 : index
    %34 = vector.load %arg2[%c104, %c0_13] : memref<288x128xf32, #tpu.memory_space<vmem>>, vector<1x32xf32>
    %c112 = arith.constant 112 : index
    %c0_14 = arith.constant 0 : index
    %35 = vector.load %arg2[%c112, %c0_14] : memref<288x128xf32, #tpu.memory_space<vmem>>, vector<1x32xf32>
    %c120 = arith.constant 120 : index
    %c0_15 = arith.constant 0 : index
    %36 = vector.load %arg2[%c120, %c0_15] : memref<288x128xf32, #tpu.memory_space<vmem>>, vector<1x32xf32>
    %cst_16 = arith.constant dense<0.000000e+00> : vector<64x64xf32>
    %37 = tpu.matmul %28, %29, %cst_16 {dimension_numbers = #tpu.dot_dimension_numbers<[1], [0], [0], [1], [0, 0, 1, 1], [], []>} : vector<64x24xf32>, vector<24x64xf32>, vector<64x64xf32> -> vector<64x64xf32>
    %38 = vector.broadcast %30 : vector<1x64xf32> to vector<64x64xf32>
    %39 = arith.addf %37, %38 : vector<64x64xf32>
    %40 = vector.extract_strided_slice %39 {offsets = [0, 0], sizes = [64, 32], strides = [1, 1]} : vector<64x64xf32> to vector<64x32xf32>
    %cst_17 = arith.constant 0.000000e+00 : f32
    %41 = vector.broadcast %cst_17 : f32 to vector<64x32xf32>
    %42 = arith.maximumf %40, %41 : vector<64x32xf32>
    %43 = vector.extract_strided_slice %39 {offsets = [0, 32], sizes = [64, 32], strides = [1, 1]} : vector<64x64xf32> to vector<64x32xf32>
    %cst_18 = arith.constant dense<0.000000e+00> : vector<64x16xf32>
    %44 = tpu.matmul %42, %31, %cst_18 {dimension_numbers = #tpu.dot_dimension_numbers<[1], [0], [0], [1], [0, 0, 1, 1], [], []>} : vector<64x32xf32>, vector<32x16xf32>, vector<64x16xf32> -> vector<64x16xf32>
    %45 = vector.broadcast %32 : vector<1x16xf32> to vector<64x16xf32>
    %46 = arith.addf %44, %45 : vector<64x16xf32>
    %cst_19 = arith.constant 0.000000e+00 : f32
    %47 = vector.broadcast %cst_19 : f32 to vector<64x16xf32>
    %48 = arith.maximumf %46, %47 : vector<64x16xf32>
    %cst_20 = arith.constant dense<0.000000e+00> : vector<64x32xf32>
    %49 = tpu.matmul %48, %33, %cst_20 {dimension_numbers = #tpu.dot_dimension_numbers<[1], [0], [0], [1], [0, 0, 1, 1], [], []>} : vector<64x16xf32>, vector<16x32xf32>, vector<64x32xf32> -> vector<64x32xf32>
    %50 = vector.broadcast %34 : vector<1x32xf32> to vector<64x32xf32>
    %51 = arith.addf %49, %50 : vector<64x32xf32>
    %52 = arith.addf %51, %43 : vector<64x32xf32>
    %cst_21 = arith.constant dense<0.000000e+00> : vector<64xf32>
    %53 = vector.multi_reduction <add>, %52, %cst_21 [1] : vector<64x32xf32> to vector<64xf32>
    %54 = vector.shape_cast %53 : vector<64xf32> to vector<64x1xf32>
    %cst_22 = arith.constant 3.200000e+01 : f32
    %55 = vector.broadcast %cst_22 : f32 to vector<64x1xf32>
    %56 = arith.divf %54, %55 : vector<64x1xf32>
    %57 = vector.broadcast %56 : vector<64x1xf32> to vector<64x32xf32>
    %58 = arith.subf %52, %57 : vector<64x32xf32>
    %59 = arith.mulf %58, %58 : vector<64x32xf32>
    %cst_23 = arith.constant dense<0.000000e+00> : vector<64xf32>
    %60 = vector.multi_reduction <add>, %59, %cst_23 [1] : vector<64x32xf32> to vector<64xf32>
    %61 = vector.shape_cast %60 : vector<64xf32> to vector<64x1xf32>
    %cst_24 = arith.constant 3.200000e+01 : f32
    %62 = vector.broadcast %cst_24 : f32 to vector<64x1xf32>
    %63 = arith.divf %61, %62 : vector<64x1xf32>
    %64 = vector.broadcast %56 : vector<64x1xf32> to vector<64x32xf32>
    %65 = arith.subf %52, %64 : vector<64x32xf32>
    %cst_25 = arith.constant 9.99999974E-6 : f32
    %66 = vector.broadcast %cst_25 : f32 to vector<64x1xf32>
    %67 = arith.addf %63, %66 : vector<64x1xf32>
    %68 = math.rsqrt %67 : vector<64x1xf32>
    %69 = vector.broadcast %68 : vector<64x1xf32> to vector<64x32xf32>
    %70 = arith.mulf %65, %69 : vector<64x32xf32>
    %71 = vector.broadcast %35 : vector<1x32xf32> to vector<64x32xf32>
    %72 = arith.mulf %70, %71 : vector<64x32xf32>
    %73 = vector.broadcast %36 : vector<1x32xf32> to vector<64x32xf32>
    %74 = arith.addf %72, %73 : vector<64x32xf32>
    %c128 = arith.constant 128 : index
    %c0_26 = arith.constant 0 : index
    %75 = vector.load %arg2[%c128, %c0_26] : memref<288x128xf32, #tpu.memory_space<vmem>>, vector<32x64xf32>
    %c160 = arith.constant 160 : index
    %c0_27 = arith.constant 0 : index
    %76 = vector.load %arg2[%c160, %c0_27] : memref<288x128xf32, #tpu.memory_space<vmem>>, vector<1x64xf32>
    %c168 = arith.constant 168 : index
    %c0_28 = arith.constant 0 : index
    %77 = vector.load %arg2[%c168, %c0_28] : memref<288x128xf32, #tpu.memory_space<vmem>>, vector<32x16xf32>
    %c200 = arith.constant 200 : index
    %c0_29 = arith.constant 0 : index
    %78 = vector.load %arg2[%c200, %c0_29] : memref<288x128xf32, #tpu.memory_space<vmem>>, vector<1x16xf32>
    %c208 = arith.constant 208 : index
    %c0_30 = arith.constant 0 : index
    %79 = vector.load %arg2[%c208, %c0_30] : memref<288x128xf32, #tpu.memory_space<vmem>>, vector<16x32xf32>
    %c224 = arith.constant 224 : index
    %c0_31 = arith.constant 0 : index
    %80 = vector.load %arg2[%c224, %c0_31] : memref<288x128xf32, #tpu.memory_space<vmem>>, vector<1x32xf32>
    %c232 = arith.constant 232 : index
    %c0_32 = arith.constant 0 : index
    %81 = vector.load %arg2[%c232, %c0_32] : memref<288x128xf32, #tpu.memory_space<vmem>>, vector<1x32xf32>
    %c240 = arith.constant 240 : index
    %c0_33 = arith.constant 0 : index
    %82 = vector.load %arg2[%c240, %c0_33] : memref<288x128xf32, #tpu.memory_space<vmem>>, vector<1x32xf32>
    %cst_34 = arith.constant dense<0.000000e+00> : vector<64x64xf32>
    %83 = tpu.matmul %74, %75, %cst_34 {dimension_numbers = #tpu.dot_dimension_numbers<[1], [0], [0], [1], [0, 0, 1, 1], [], []>} : vector<64x32xf32>, vector<32x64xf32>, vector<64x64xf32> -> vector<64x64xf32>
    %84 = vector.broadcast %76 : vector<1x64xf32> to vector<64x64xf32>
    %85 = arith.addf %83, %84 : vector<64x64xf32>
    %86 = vector.extract_strided_slice %85 {offsets = [0, 0], sizes = [64, 32], strides = [1, 1]} : vector<64x64xf32> to vector<64x32xf32>
    %cst_35 = arith.constant 0.000000e+00 : f32
    %87 = vector.broadcast %cst_35 : f32 to vector<64x32xf32>
    %88 = arith.maximumf %86, %87 : vector<64x32xf32>
    %89 = vector.extract_strided_slice %85 {offsets = [0, 32], sizes = [64, 32], strides = [1, 1]} : vector<64x64xf32> to vector<64x32xf32>
    %cst_36 = arith.constant dense<0.000000e+00> : vector<64x16xf32>
    %90 = tpu.matmul %88, %77, %cst_36 {dimension_numbers = #tpu.dot_dimension_numbers<[1], [0], [0], [1], [0, 0, 1, 1], [], []>} : vector<64x32xf32>, vector<32x16xf32>, vector<64x16xf32> -> vector<64x16xf32>
    %91 = vector.broadcast %78 : vector<1x16xf32> to vector<64x16xf32>
    %92 = arith.addf %90, %91 : vector<64x16xf32>
    %cst_37 = arith.constant 0.000000e+00 : f32
    %93 = vector.broadcast %cst_37 : f32 to vector<64x16xf32>
    %94 = arith.maximumf %92, %93 : vector<64x16xf32>
    %cst_38 = arith.constant dense<0.000000e+00> : vector<64x32xf32>
    %95 = tpu.matmul %94, %79, %cst_38 {dimension_numbers = #tpu.dot_dimension_numbers<[1], [0], [0], [1], [0, 0, 1, 1], [], []>} : vector<64x16xf32>, vector<16x32xf32>, vector<64x32xf32> -> vector<64x32xf32>
    %96 = vector.broadcast %80 : vector<1x32xf32> to vector<64x32xf32>
    %97 = arith.addf %95, %96 : vector<64x32xf32>
    %98 = arith.addf %97, %89 : vector<64x32xf32>
    %cst_39 = arith.constant dense<0.000000e+00> : vector<64xf32>
    %99 = vector.multi_reduction <add>, %98, %cst_39 [1] : vector<64x32xf32> to vector<64xf32>
    %100 = vector.shape_cast %99 : vector<64xf32> to vector<64x1xf32>
    %cst_40 = arith.constant 3.200000e+01 : f32
    %101 = vector.broadcast %cst_40 : f32 to vector<64x1xf32>
    %102 = arith.divf %100, %101 : vector<64x1xf32>
    %103 = vector.broadcast %102 : vector<64x1xf32> to vector<64x32xf32>
    %104 = arith.subf %98, %103 : vector<64x32xf32>
    %105 = arith.mulf %104, %104 : vector<64x32xf32>
    %cst_41 = arith.constant dense<0.000000e+00> : vector<64xf32>
    %106 = vector.multi_reduction <add>, %105, %cst_41 [1] : vector<64x32xf32> to vector<64xf32>
    %107 = vector.shape_cast %106 : vector<64xf32> to vector<64x1xf32>
    %cst_42 = arith.constant 3.200000e+01 : f32
    %108 = vector.broadcast %cst_42 : f32 to vector<64x1xf32>
    %109 = arith.divf %107, %108 : vector<64x1xf32>
    %110 = vector.broadcast %102 : vector<64x1xf32> to vector<64x32xf32>
    %111 = arith.subf %98, %110 : vector<64x32xf32>
    %cst_43 = arith.constant 9.99999974E-6 : f32
    %112 = vector.broadcast %cst_43 : f32 to vector<64x1xf32>
    %113 = arith.addf %109, %112 : vector<64x1xf32>
    %114 = math.rsqrt %113 : vector<64x1xf32>
    %115 = vector.broadcast %114 : vector<64x1xf32> to vector<64x32xf32>
    %116 = arith.mulf %111, %115 : vector<64x32xf32>
    %117 = vector.broadcast %81 : vector<1x32xf32> to vector<64x32xf32>
    %118 = arith.mulf %116, %117 : vector<64x32xf32>
    %119 = vector.broadcast %82 : vector<1x32xf32> to vector<64x32xf32>
    %120 = arith.addf %118, %119 : vector<64x32xf32>
    %c248 = arith.constant 248 : index
    %c0_44 = arith.constant 0 : index
    %121 = vector.load %arg2[%c248, %c0_44] : memref<288x128xf32, #tpu.memory_space<vmem>>, vector<32x32xf32>
    %c280 = arith.constant 280 : index
    %c0_45 = arith.constant 0 : index
    %122 = vector.load %arg2[%c280, %c0_45] : memref<288x128xf32, #tpu.memory_space<vmem>>, vector<1x32xf32>
    %cst_46 = arith.constant dense<0.000000e+00> : vector<64x32xf32>
    %123 = tpu.matmul %120, %121, %cst_46 {dimension_numbers = #tpu.dot_dimension_numbers<[1], [0], [0], [1], [0, 0, 1, 1], [], []>} : vector<64x32xf32>, vector<32x32xf32>, vector<64x32xf32> -> vector<64x32xf32>
    %124 = vector.broadcast %122 : vector<1x32xf32> to vector<64x32xf32>
    %125 = arith.addf %123, %124 : vector<64x32xf32>
    %126 = vector.extract_strided_slice %125 {offsets = [0, 0], sizes = [64, 16], strides = [1, 1]} : vector<64x32xf32> to vector<64x16xf32>
    %127 = vector.extract_strided_slice %125 {offsets = [0, 16], sizes = [64, 16], strides = [1, 1]} : vector<64x32xf32> to vector<64x16xf32>
    %cst_47 = arith.constant 5.000000e-01 : f32
    %128 = vector.broadcast %cst_47 : f32 to vector<64x16xf32>
    %129 = arith.mulf %128, %127 : vector<64x16xf32>
    %130 = math.exp %129 : vector<64x16xf32>
    %131 = arith.mulf %3, %130 : vector<64x16xf32>
    %132 = arith.addf %131, %126 : vector<64x16xf32>
    %133 = tpu.concatenate %125, %132 in 1 : vector<64x32xf32>, vector<64x16xf32> -> vector<64x48xf32>
    %cst_48 = arith.constant 0.000000e+00 : f32
    %134 = vector.broadcast %cst_48 : f32 to vector<64x80xf32>
    %135 = tpu.concatenate %133, %134 in 1 : vector<64x48xf32>, vector<64x80xf32> -> vector<64x128xf32>
    %c0_49 = arith.constant 0 : index
    %c0_50 = arith.constant 0 : index
    %136 = vector.load %arg3[%c0_49, %c0_50] : memref<64x128xf32, #tpu.memory_space<vmem>>, vector<64x128xf32>
    tpu.vector_store %arg3[%c0_49, %c0_50], %135 {strides = array<i32>} : memref<64x128xf32, #tpu.memory_space<vmem>>, vector<64x128xf32>,
    return
  }
  func.func @transform_0(%arg0: i32) -> (i32, i32) {
    %c0_i32 = arith.constant 0 : i32
    %c0_i32_0 = arith.constant 0 : i32
    return %arg0, %c0_i32 : i32, i32
  }
  func.func @transform_1(%arg0: i32) -> (i32, i32) {
    %c0_i32 = arith.constant 0 : i32
    %c0_i32_0 = arith.constant 0 : i32
    %c0_i32_1 = arith.constant 0 : i32
    return %c0_i32, %c0_i32_0 : i32, i32
  }
  func.func @transform_2(%arg0: i32) -> (i32, i32) {
    %c0_i32 = arith.constant 0 : i32
    %c0_i32_0 = arith.constant 0 : i32
    return %arg0, %c0_i32 : i32, i32
  }
}

</mosaic_0001>

<bundles_post_ra>
// kernel: forward.1
= control target key start
LH: loop header
LB: loop body
LE: loop exit
PB: predicated region body
PF: predicated region fallthrough
CT: control target
= control target key end

     0   :  { %s2184_s13 = smov 24   ;;  %s2185_s26 = smov 104   ;;  %vm93_vm0 = vcmask 195584   ;;  %vm438_vm1 = vcmask 261120   ;;  %vm580_vm2 = vcmask 130048   ;;  %vm1759_vm3 = vcmask 392192   ;;  %s2731_s0 = inlined_call_operand.vmem [shape: f32[64,128], index: 0, kind: input, shape index: {}]   ;;  %s2732_s1 = inlined_call_operand.vmem [shape: f32[288,128], index: 1, kind: input, shape index: {}]   ;;  %s2733_s2 = inlined_call_operand.vmem [shape: f32[64,128], index: 2, kind: output, shape index: {}]  }
   0x1   :  { %v11_v0 = vld [vmem:[%s2731_s0] sm:$0xff]  ;;  %v13_v1 = vld [vmem:[%s2731_s0 + $0x10] sm:$0xff]  ;;  %v12_v2 = vld [vmem:[%s2731_s0 + $0x8] sm:$0xff]  ;;  %s2186_s23 = smov 96   ;;  %s2187_s16 = smov 48  }
   0x2   :  { %27 = vrot.lane.b32.xlu0 %v11_v0, %s2184_s13  ;;  %31 = vrot.lane.b32.xlu1 %v13_v1, %s2184_s13  ;;  %v14_v3 = vld [vmem:[%s2731_s0 + $0x18] sm:$0xff]  ;;  %v15_v4 = vld [vmem:[%s2731_s0 + $0x20] sm:$0xff]  ;;  %s2189_s21 = smov 112  }
   0x3   :  { %v16_v5 = vld [vmem:[%s2731_s0 + $0x28] sm:$0xff]  ;;  %v17_v6 = vld [vmem:[%s2731_s0 + $0x30] sm:$0xff]  ;;  %v18_v7 = vld [vmem:[%s2731_s0 + $0x38] sm:$0xff] }
   0x6   :  { %29 = vrot.lane.b32.xlu0 %v12_v2, %s2184_s13  ;;  %33 = vrot.lane.b32.xlu1 %v14_v3, %s2184_s13 }
   0xa   :  { %35 = vrot.lane.b32.xlu0 %v15_v4, %s2184_s13  ;;  %37 = vrot.lane.b32.xlu1 %v16_v5, %s2184_s13 }
   0xe   :  { %39 = vrot.lane.b32.xlu0 %v17_v6, %s2184_s13  ;;  %41 = vrot.lane.b32.xlu1 %v18_v7, %s2184_s13 }
  0x74   :  { %v28_v8 = vpop.permute.xlu0 %27  ;;  %v32_v9 = vpop.permute.xlu1 %31 }
  0x75   :  { %v51_v10 = vsub.f32 %v11_v0, %v28_v8  ;;  %v53_v11 = vsub.f32 %v13_v1, %v32_v9 }
  0x77   :  { %69 = vrot.lane.b32.xlu0 %v51_v10, %s2185_s26 }
  0x78   :  { %v30_v12 = vpop.permute.xlu0 %29  ;;  %v34_v13 = vpop.permute.xlu1 %33 }
  0x79   :  { %v52_v14 = vsub.f32 %v12_v2, %v30_v12  ;;  %v54_v15 = vsub.f32 %v14_v3, %v34_v13 }
  0x7b   :  { %73 = vrot.lane.b32.xlu0 %v53_v11, %s2185_s26  ;;  %71 = vrot.lane.b32.xlu1 %v52_v14, %s2185_s26 }
  0x7c   :  { %v36_v16 = vpop.permute.xlu0 %35  ;;  %v38_v17 = vpop.permute.xlu1 %37 }
  0x7d   :  { %v55_v18 = vsub.f32 %v15_v4, %v36_v16  ;;  %v56_v19 = vsub.f32 %v16_v5, %v38_v17 }
  0x7f   :  { %75 = vrot.lane.b32.xlu1 %v54_v15, %s2185_s26  ;;  %77 = vrot.lane.b32.xlu0 %v55_v18, %s2185_s26 }
  0x80   :  { %v40_v20 = vpop.permute.xlu0 %39  ;;  %v42_v21 = vpop.permute.xlu1 %41 }
  0x81   :  { %v57_v22 = vsub.f32 %v17_v6, %v40_v20  ;;  %v58_v23 = vsub.f32 %v18_v7, %v42_v21 }
  0x83   :  { %79 = vrot.lane.b32.xlu1 %v56_v19, %s2185_s26  ;;  %81 = vrot.lane.b32.xlu0 %v57_v22, %s2185_s26 }
  0x87   :  { %83 = vrot.lane.b32.xlu1 %v58_v23, %s2185_s26 }
  0xe9   :  { %v70_v24 = vpop.permute.xlu0 %69 }
  0xea   :  { %v94_v25 = vsel %vm93_vm0, %v70_v24, 0.0  ;;  %v1780_v24 = vld [vmem:[%s2732_s1] ss:$0 sm:$0xff] }
  0xeb   :  { %95 = vadd.xlane.f32.xlu0 %v94_v25  ;;  %v1781_v25 = vld [vmem:[%s2732_s1 + $0x8] ss:$0 sm:$0xff] }
  0xed   :  { %v72_v26 = vpop.permute.xlu1 %71  ;;  %v74_v27 = vpop.permute.xlu0 %73 }
  0xee   :  { %v97_v28 = vsel %vm93_vm0, %v72_v26, 0.0  ;;  %v100_v29 = vsel %vm93_vm0, %v74_v27, 0.0  ;;  %v263_v26 = vld [vmem:[%s2732_s1 + $0x10] sm:$0xff]  ;;  %v264_v27 = vld [vmem:[%s2732_s1 + $0x18] sm:$0xff] }
  0xef   :  { %98 = vadd.xlane.f32.xlu1 %v97_v28  ;;  %101 = vadd.xlane.f32.xlu0 %v100_v29  ;;  %v2058_v28 = vpack.c.bf16 %v264_v27, %v263_v26 }
  0xf1   :  { %v76_v30 = vpop.permute.xlu1 %75  ;;  %v78_v31 = vpop.permute.xlu0 %77  ;;  %2059 = vmatprep.subr.bf16.mxu0 %v2058_v28  ;;  %2102 = vmatprep.subr.bf16.mxu1 %v2058_v28 }
  0xf2   :  { %v103_v32 = vsel %vm93_vm0, %v76_v30, 0.0  ;;  %v106_v33 = vsel %vm93_vm0, %v78_v31, 0.0  ;;  %2061 = vmatpush3.bf16.msra.mxu0 %v2058_v28  ;;  %2104 = vmatpush3.bf16.msra.mxu1 %v2058_v28 }
  0xf3   :  { %104 = vadd.xlane.f32.xlu0 %v103_v32  ;;  %107 = vadd.xlane.f32.xlu1 %v106_v33 }
  0xf5   :  { %v80_v34 = vpop.permute.xlu1 %79  ;;  %v82_v35 = vpop.permute.xlu0 %81 }
  0xf6   :  { %v109_v36 = vsel %vm93_vm0, %v80_v34, 0.0  ;;  %v112_v37 = vsel %vm93_vm0, %v82_v35, 0.0 }
  0xf7   :  { %110 = vadd.xlane.f32.xlu0 %v109_v36  ;;  %113 = vadd.xlane.f32.xlu1 %v112_v37 }
  0xf9   :  { %v84_v38 = vpop.permute.xlu1 %83 }
  0xfa   :  { %v115_v39 = vsel %vm93_vm0, %v84_v38, 0.0 }
  0xfb   :  { %116 = vadd.xlane.f32.xlu0 %v115_v39 }
 0x178   :  { %v96_v40 = vpop.xlane.xlu0 %95 }
 0x179   :  { %v119_v41 = vmul.f32 0.041666668, %v96_v40 }
 0x17b   :  { %v2253_v42 = vsub.f32 %v51_v10, %v119_v41 }
 0x17c   :  { %v99_v43 = vpop.xlane.xlu1 %98  ;;  %v102_v44 = vpop.xlane.xlu0 %101 }
 0x17d   :  { %v120_v45 = vmul.f32 0.041666668, %v99_v43  ;;  %v121_v46 = vmul.f32 0.041666668, %v102_v44  ;;  %v135_v47 = vmul.f32 %v2253_v42, %v2253_v42  ;;  %v265_v43 = vld [vmem:[%s2732_s1 + $0x20] sm:$0xff] }
 0x17e   :  { %1932 = vmatprep.subr.mxu0 %v265_v43  ;;  %2103 = vmatprep.subr.mxu1 %v265_v43 }
 0x17f   :  { %v2257_v48 = vsub.f32 %v52_v14, %v120_v45  ;;  %v2259_v49 = vsub.f32 %v53_v11, %v121_v46  ;;  %151 = vrot.lane.b32.xlu1 %v135_v47, %s2185_s26  ;;  %1933 = vmatpush3.msra.mxu0 %v265_v43 }
 0x180   :  { %v108_v50 = vpop.xlane.xlu1 %107  ;;  %v105_v51 = vpop.xlane.xlu0 %104  ;;  %2105 = vmatpush3.msra.mxu1 %v265_v43 }
 0x181   :  { %v123_v52 = vmul.f32 0.041666668, %v108_v50  ;;  %v122_v53 = vmul.f32 0.041666668, %v105_v51  ;;  %v136_v54 = vmul.f32 %v2257_v48, %v2257_v48  ;;  %v137_v55 = vmul.f32 %v2259_v49, %v2259_v49 }
 0x183   :  { %v2266_v56 = vsub.f32 %v55_v18, %v123_v52  ;;  %v2268_v57 = vsub.f32 %v54_v15, %v122_v53  ;;  %153 = vrot.lane.b32.xlu0 %v136_v54, %s2185_s26  ;;  %155 = vrot.lane.b32.xlu1 %v137_v55, %s2185_s26 }
 0x184   :  { %v114_v58 = vpop.xlane.xlu1 %113  ;;  %v111_v59 = vpop.xlane.xlu0 %110 }
 0x185   :  { %v125_v60 = vmul.f32 0.041666668, %v114_v58  ;;  %v124_v61 = vmul.f32 0.041666668, %v111_v59  ;;  %v139_v62 = vmul.f32 %v2266_v56, %v2266_v56  ;;  %v138_v63 = vmul.f32 %v2268_v57, %v2268_v57 }
 0x187   :  { %v2276_v0 = vsub.f32 %v57_v22, %v125_v60  ;;  %v2278_v1 = vsub.f32 %v56_v19, %v124_v61  ;;  %159 = vrot.lane.b32.xlu0 %v139_v62, %s2185_s26  ;;  %157 = vrot.lane.b32.xlu1 %v138_v63, %s2185_s26 }
 0x188   :  { %v117_v2 = vpop.xlane.xlu0 %116 }
 0x189   :  { %v126_v3 = vmul.f32 0.041666668, %v117_v2  ;;  %v141_v4 = vmul.f32 %v2276_v0, %v2276_v0  ;;  %v140_v5 = vmul.f32 %v2278_v1, %v2278_v1 }
 0x18b   :  { %v2286_v6 = vsub.f32 %v58_v23, %v126_v3  ;;  %163 = vrot.lane.b32.xlu0 %v141_v4, %s2185_s26  ;;  %161 = vrot.lane.b32.xlu1 %v140_v5, %s2185_s26 }
 0x18d   :  { %v142_v7 = vmul.f32 %v2286_v6, %v2286_v6 }
 0x18f   :  { %165 = vrot.lane.b32.xlu1 %v142_v7, %s2185_s26 }
 0x1f1   :  { %v152_v8 = vpop.permute.xlu1 %151 }
 0x1f2   :  { %v175_v9 = vsel %vm93_vm0, %v152_v8, 0.0 }
 0x1f3   :  { %176 = vadd.xlane.f32.xlu0 %v175_v9 }
 0x1f5   :  { %v156_v10 = vpop.permute.xlu1 %155  ;;  %v154_v11 = vpop.permute.xlu0 %153 }
 0x1f6   :  { %v181_v12 = vsel %vm93_vm0, %v156_v10, 0.0  ;;  %v178_v13 = vsel %vm93_vm0, %v154_v11, 0.0 }
 0x1f7   :  { %182 = vadd.xlane.f32.xlu0 %v181_v12  ;;  %179 = vadd.xlane.f32.xlu1 %v178_v13 }
 0x1f9   :  { %v158_v14 = vpop.permute.xlu1 %157  ;;  %v160_v15 = vpop.permute.xlu0 %159 }
 0x1fa   :  { %v184_v16 = vsel %vm93_vm0, %v158_v14, 0.0  ;;  %v187_v17 = vsel %vm93_vm0, %v160_v15, 0.0 }
 0x1fb   :  { %185 = vadd.xlane.f32.xlu0 %v184_v16  ;;  %188 = vadd.xlane.f32.xlu1 %v187_v17 }
 0x1fd   :  { %v162_v18 = vpop.permute.xlu1 %161  ;;  %v164_v19 = vpop.permute.xlu0 %163 }
 0x1fe   :  { %v190_v20 = vsel %vm93_vm0, %v162_v18, 0.0  ;;  %v193_v21 = vsel %vm93_vm0, %v164_v19, 0.0 }
 0x1ff   :  { %191 = vadd.xlane.f32.xlu0 %v190_v20  ;;  %194 = vadd.xlane.f32.xlu1 %v193_v21 }
 0x201   :  { %v166_v22 = vpop.permute.xlu1 %165 }
 0x202   :  { %v196_v23 = vsel %vm93_vm0, %v166_v22, 0.0 }
 0x203   :  { %197 = vadd.xlane.f32.xlu0 %v196_v23 }
 0x210   :  { %236 = vrot.lane.b32.xlu1 %v1780_v24, %s2184_s13 }
 0x219   :  { %252 = vrot.lane.b32.xlu0 %v1781_v25, %s2184_s13 }
 0x280   :  { %v177_v29 = vpop.xlane.xlu0 %176 }
 0x281   :  { %v199_v30 = vmul.f32 0.041666668, %v177_v29 }
 0x283   :  { %v207_v31 = vadd.f32 1e-05, %v199_v30 }
 0x284   :  { %v180_v32 = vpop.xlane.xlu1 %179  ;;  %v183_v33 = vpop.xlane.xlu0 %182 }
 0x285   :  { %2112 = vrsqrt.f32 %v207_v31  ;;  %v200_v34 = vmul.f32 0.041666668, %v180_v32  ;;  %v201_v35 = vmul.f32 0.041666668, %v183_v33 }
 0x287   :  { %v208_v36 = vadd.f32 1e-05, %v200_v34  ;;  %v209_v37 = vadd.f32 1e-05, %v201_v35  ;;  %v269_v35 = vld [vmem:[%s2732_s1 + $0x40] sm:$0xff] }
 0x288   :  { %v189_v38 = vpop.xlane.xlu1 %188  ;;  %v186_v39 = vpop.xlane.xlu0 %185 }
 0x289   :  { %2114 = vrsqrt.f32 %v208_v36  ;;  %v203_v40 = vmul.f32 0.041666668, %v189_v38  ;;  %v202_v41 = vmul.f32 0.041666668, %v186_v39  ;;  %v270_v36 = vld [vmem:[%s2732_s1 + $0x48] sm:$0xff] }
 0x28a   :  { %2116 = vrsqrt.f32 %v209_v37  ;;  %v2066_v37 = vpack.c.bf16 %v270_v36, %v269_v35  ;;  %v1782_v38 = vld [vmem:[%s2732_s1 + $0x28] ss:$0 sm:$0xff] }
 0x28b   :  { %v211_v44 = vadd.f32 1e-05, %v203_v40  ;;  %v210_v45 = vadd.f32 1e-05, %v202_v41 }
 0x28c   :  { %v195_v46 = vpop.xlane.xlu1 %194  ;;  %v192_v47 = vpop.xlane.xlu0 %191 }
 0x28d   :  { %2118 = vrsqrt.f32 %v211_v44  ;;  %v205_v50 = vmul.f32 0.041666668, %v195_v46  ;;  %v204_v51 = vmul.f32 0.041666668, %v192_v47  ;;  %v272_v44 = vld [vmem:[%s2732_s1 + $0x58] sm:$0xff] }
 0x28e   :  { %2120 = vrsqrt.f32 %v210_v45  ;;  %v273_v45 = vld [vmem:[%s2732_s1 + $0x60] sm:$0xff] }
 0x28f   :  { %v2113_v52 = vpop.eup %2112  ;;  %v213_v53 = vadd.f32 1e-05, %v205_v50  ;;  %v212_v54 = vadd.f32 1e-05, %v204_v51  ;;  %v2070_v46 = vpack.c.bf16 %v273_v45, %v272_v44 }
 0x290   :  { %v198_v55 = vpop.xlane.xlu0 %197  ;;  %v237_v58 = vpop.permute.xlu1 %236  ;;  %v223_v59 = vmul.f32 %v2113_v52, %v2253_v42 }
 0x291   :  { %2122 = vrsqrt.f32 %v213_v53  ;;  %v206_v60 = vmul.f32 0.041666668, %v198_v55  ;;  %2071 = vmatprep.subr.bf16.mxu0 %v2070_v46 }
 0x292   :  { %2124 = vrsqrt.f32 %v212_v54  ;;  %v239_v61 = vmul.f32 %v237_v58, %v223_v59 }
 0x293   :  { %v2115_v62 = vpop.eup %2114  ;;  %v214_v63 = vadd.f32 1e-05, %v206_v60 }
 0x294   :  { %v2117_v2 = vpop.eup %2116  ;;  %v253_v3 = vpop.permute.xlu0 %252  ;;  %v224_v4 = vmul.f32 %v2115_v62, %v2257_v48  ;;  %v267_v48 = vld [vmem:[%s2732_s1 + $0x30] sm:$0xff] }
 0x295   :  { %2126 = vrsqrt.f32 %v214_v63  ;;  %v255_v5 = vadd.f32 %v253_v3, %v239_v61  ;;  %v225_v7 = vmul.f32 %v2117_v2, %v2259_v49  ;;  %v268_v49 = vld [vmem:[%s2732_s1 + $0x38] sm:$0xff] }
 0x296   :  { %v240_v8 = vmul.f32 %v237_v58, %v224_v4  ;;  %v2062_v18 = vpack.c.bf16 %v268_v49, %v267_v48 }
 0x297   :  { %v2119_v9 = vpop.eup %2118  ;;  %289 = vrot.lane.b32.xlu1 %v255_v5, %s2185_s26  ;;  %v241_v10 = vmul.f32 %v237_v58, %v225_v7 }
 0x298   :  { %v2121_v42 = vpop.eup %2120  ;;  %v256_v11 = vadd.f32 %v253_v3, %v240_v8  ;;  %v227_v12 = vmul.f32 %v2119_v9, %v2266_v56  ;;  %2063 = vmatprep.subr.bf16.mxu1 %v2062_v18 }
 0x299   :  { %v257_v13 = vadd.f32 %v253_v3, %v241_v10  ;;  %v226_v14 = vmul.f32 %v2121_v42, %v2268_v57  ;;  %v1791_v10 = vld [vmem:[%s2732_s1 + $0x50] ss:$0 sm:$0xff] }
 0x29a   :  { %v243_v15 = vmul.f32 %v237_v58, %v227_v12 }
 0x29b   :  { %v2123_v16 = vpop.eup %2122  ;;  %293 = vrot.lane.b32.xlu0 %v257_v13, %s2185_s26  ;;  %291 = vrot.lane.b32.xlu1 %v256_v11, %s2185_s26  ;;  %v242_v17 = vmul.f32 %v237_v58, %v226_v14 }
 0x29c   :  { %v2125_v56 = vpop.eup %2124  ;;  %v259_v19 = vadd.f32 %v253_v3, %v243_v15  ;;  %v229_v57 = vmul.f32 %v2123_v16, %v2276_v0 }
 0x29d   :  { %v258_v20 = vadd.f32 %v253_v3, %v242_v17  ;;  %v228_v21 = vmul.f32 %v2125_v56, %v2278_v1 }
 0x29e   :  { %v245_v22 = vmul.f32 %v237_v58, %v229_v57 }
 0x29f   :  { %v2127_v23 = vpop.eup %2126  ;;  %297 = vrot.lane.b32.xlu0 %v259_v19, %s2185_s26  ;;  %295 = vrot.lane.b32.xlu1 %v258_v20, %s2185_s26  ;;  %v244_v24 = vmul.f32 %v237_v58, %v228_v21 }
 0x2a0   :  { %v261_v25 = vadd.f32 %v253_v3, %v245_v22  ;;  %v230_v26 = vmul.f32 %v2127_v23, %v2286_v6 }
 0x2a1   :  { %v260_v27 = vadd.f32 %v253_v3, %v244_v24 }
 0x2a2   :  { %v246_v28 = vmul.f32 %v237_v58, %v230_v26 }
 0x2a3   :  { %301 = vrot.lane.b32.xlu0 %v261_v25, %s2185_s26  ;;  %299 = vrot.lane.b32.xlu1 %v260_v27, %s2185_s26 }
 0x2a4   :  { %v262_v0 = vadd.f32 %v253_v3, %v246_v28 }
 0x2a7   :  { %303 = vrot.lane.b32.xlu1 %v262_v0, %s2185_s26 }
 0x309   :  { %v290_v1 = vpop.permute.xlu1 %289 }
 0x30a   :  { %1934 = vmatprep.mubr.msk.f32.mxu0 %vm93_vm0, %v290_v1 }
 0x30d   :  { %v294_v29 = vpop.permute.xlu0 %293  ;;  %v292_v30 = vpop.permute.xlu1 %291 }
 0x30e   :  { %1935 = vmatmul.mubr.msk.f32.vlgmr.msra.gmra.mrb[0].mxu0 %vm93_vm0, %v292_v30 }
 0x30f   :  { %1937 = vmatprep.mubr.msk.f32.mxu0 %vm93_vm0, %v294_v29  ;;  %2073 = vmatpush3.bf16.msra.mxu0 %v2070_v46  ;;  %v1800_v29 = vld [vmem:[%s2732_s1 + $0x68] ss:$0 sm:$0xff] }
 0x311   :  { %v298_v31 = vpop.permute.xlu0 %297  ;;  %v296_v6 = vpop.permute.xlu1 %295 }
 0x312   :  { %1940 = vmatprep.mubr.msk.f32.mxu1 %vm93_vm0, %v298_v31  ;;  %1938 = vmatmul.mubr.msk.f32.gmra.mrb[2].mxu0 %vm93_vm0, %v296_v6 }
 0x315   :  { %v300_v32 = vpop.permute.xlu1 %299  ;;  %v302_v33 = vpop.permute.xlu0 %301 }
 0x316   :  { %1941 = vmatmul.mubr.msk.f32.vlgmr.msra.gmra.mrb[0].mxu1 %vm93_vm0, %v300_v32 }
 0x317   :  { %1943 = vmatprep.mubr.msk.f32.mxu1 %vm93_vm0, %v302_v33  ;;  %2065 = vmatpush3.bf16.msra.mxu1 %v2062_v18 }
 0x318   :  { %2067 = vmatprep.subr.bf16.mxu1 %v2066_v37 }
 0x319   :  { %v304_v34 = vpop.permute.xlu1 %303 }
 0x31a   :  { %1944 = vmatmul.mubr.msk.f32.gmra.mrb[2].mxu1 %vm93_vm0, %v304_v34 }
 0x31b   :  { %2069 = vmatpush3.bf16.msra.mxu1 %v2066_v37 }
 0x3e1   :  { %v1936_v39 = vpop.f32.mrb[0].mxu0 }
 0x3e2   :  { %v393_v40 = vadd.f32 %v1936_v39, %v1782_v38  ;;  %v387_v41 = vpop.f32.mrb[1].mxu0 }
 0x3e3   :  { %v388_v43 = vadd.f32 %v1782_v38, %v387_v41 }
 0x3e4   :  { %720 = vrot.lane.b32.xlu1 %v393_v40, %s2186_s23  ;;  %v427_v51 = vmax.f32 %v393_v40, 0.0 }
 0x3e5   :  { %v426_v47 = vmax.f32 %v388_v43, 0.0  ;;  %718 = vrot.lane.b32.xlu0 %v388_v43, %s2186_s23  ;;  %v1939_v50 = vpop.f32.mrb[2].mxu0 }
 0x3e6   :  { %v403_v52 = vadd.f32 %v1939_v50, %v1782_v38  ;;  %v397_v53 = vpop.f32.mrb[3].mxu0 }
 0x3e7   :  { %v398_v54 = vadd.f32 %v1782_v38, %v397_v53  ;;  %1954 = vmatprep.mubr.msk.f32.mxu1 %vm438_vm1, %v426_v47 }
 0x3e8   :  { %724 = vrot.lane.b32.xlu1 %v403_v52, %s2186_s23  ;;  %1955 = vmatmul.mubr.msk.f32.vlgmr.msra.gmra.mrb[4].mxu1 %vm438_vm1, %v427_v51  ;;  %v429_v59 = vmax.f32 %v403_v52, 0.0 }
 0x3e9   :  { %v428_v55 = vmax.f32 %v398_v54, 0.0  ;;  %722 = vrot.lane.b32.xlu0 %v398_v54, %s2186_s23  ;;  %v1942_v58 = vpop.f32.mrb[0].mxu1 }
 0x3ea   :  { %v413_v60 = vadd.f32 %v1942_v58, %v1782_v38  ;;  %v407_v61 = vpop.f32.mrb[1].mxu1 }
 0x3eb   :  { %v408_v62 = vadd.f32 %v1782_v38, %v407_v61  ;;  %1957 = vmatprep.mubr.msk.f32.mxu1 %vm438_vm1, %v428_v55 }
 0x3ec   :  { %728 = vrot.lane.b32.xlu1 %v413_v60, %s2186_s23  ;;  %1958 = vmatmul.mubr.msk.f32.gmra.mrb[6].mxu1 %vm438_vm1, %v429_v59  ;;  %v431_v3 = vmax.f32 %v413_v60, 0.0 }
 0x3ed   :  { %v430_v63 = vmax.f32 %v408_v62, 0.0  ;;  %726 = vrot.lane.b32.xlu0 %v408_v62, %s2186_s23  ;;  %v1945_v2 = vpop.f32.mrb[2].mxu1 }
 0x3ee   :  { %v423_v4 = vadd.f32 %v1945_v2, %v1782_v38  ;;  %v417_v5 = vpop.f32.mrb[3].mxu1 }
 0x3ef   :  { %v418_v7 = vadd.f32 %v1782_v38, %v417_v5  ;;  %1960 = vmatprep.mubr.msk.f32.mxu1 %vm438_vm1, %v430_v63 }
 0x3f0   :  { %1961 = vmatmul.mubr.msk.f32.gmra.mrb[8].mxu1 %vm438_vm1, %v431_v3  ;;  %732 = vrot.lane.b32.xlu1 %v423_v4, %s2186_s23  ;;  %v433_v9 = vmax.f32 %v423_v4, 0.0 }
 0x3f1   :  { %v432_v8 = vmax.f32 %v418_v7, 0.0  ;;  %730 = vrot.lane.b32.xlu0 %v418_v7, %s2186_s23 }
 0x3f3   :  { %1963 = vmatprep.mubr.msk.f32.mxu1 %vm438_vm1, %v432_v8 }
 0x3f4   :  { %1964 = vmatmul.mubr.msk.f32.gmra.mrb[10].mxu1 %vm438_vm1, %v433_v9 }
 0x456   :  { %v721_v30 = vpop.permute.xlu1 %720 }
 0x457   :  { %v719_v1 = vpop.permute.xlu0 %718 }
 0x45a   :  { %v725_v38 = vpop.permute.xlu1 %724 }
 0x45b   :  { %v723_v34 = vpop.permute.xlu0 %722 }
 0x45e   :  { %v729_v55 = vpop.permute.xlu1 %728 }
 0x45f   :  { %v727_v47 = vpop.permute.xlu0 %726 }
 0x462   :  { %v733_v7 = vpop.permute.xlu1 %732 }
 0x463   :  { %v731_v4 = vpop.permute.xlu0 %730 }
 0x4bb   :  { %v1956_v42 = vpop.f32.mrb[4].mxu1 }
 0x4bc   :  { %v535_v11 = vadd.f32 %v1956_v42, %v1791_v10  ;;  %v529_v12 = vpop.f32.mrb[5].mxu1 }
 0x4bd   :  { %v530_v13 = vadd.f32 %v1791_v10, %v529_v12 }
 0x4be   :  { %v569_v48 = vmax.f32 %v535_v11, 0.0 }
 0x4bf   :  { %v568_v14 = vmax.f32 %v530_v13, 0.0  ;;  %v1959_v15 = vpop.f32.mrb[6].mxu1 }
 0x4c0   :  { %v545_v49 = vadd.f32 %v1959_v15, %v1791_v10  ;;  %v539_v16 = vpop.f32.mrb[7].mxu1 }
 0x4c1   :  { %v540_v17 = vadd.f32 %v1791_v10, %v539_v16  ;;  %1970 = vmatprep.mubr.msk.f32.mxu0 %vm580_vm2, %v568_v14 }
 0x4c2   :  { %1971 = vmatmul.mubr.msk.f32.vlgmr.msra.gmra.mrb[4].mxu0 %vm580_vm2, %v569_v48  ;;  %v571_v19 = vmax.f32 %v545_v49, 0.0 }
 0x4c3   :  { %v570_v18 = vmax.f32 %v540_v17, 0.0  ;;  %v1962_v56 = vpop.f32.mrb[8].mxu1 }
 0x4c4   :  { %v555_v57 = vadd.f32 %v1962_v56, %v1791_v10  ;;  %v549_v20 = vpop.f32.mrb[9].mxu1 }
 0x4c5   :  { %v550_v21 = vadd.f32 %v1791_v10, %v549_v20  ;;  %1973 = vmatprep.mubr.msk.f32.mxu0 %vm580_vm2, %v570_v18 }
 0x4c6   :  { %1974 = vmatmul.mubr.msk.f32.gmra.mrb[6].mxu0 %vm580_vm2, %v571_v19  ;;  %v573_v24 = vmax.f32 %v555_v57, 0.0 }
 0x4c7   :  { %v572_v22 = vmax.f32 %v550_v21, 0.0  ;;  %v1965_v23 = vpop.f32.mrb[10].mxu1 }
 0x4c8   :  { %v565_v25 = vadd.f32 %v1965_v23, %v1791_v10  ;;  %v559_v26 = vpop.f32.mrb[11].mxu1 }
 0x4c9   :  { %v560_v27 = vadd.f32 %v1791_v10, %v559_v26  ;;  %1976 = vmatprep.mubr.msk.f32.mxu0 %vm580_vm2, %v572_v22 }
 0x4ca   :  { %1977 = vmatmul.mubr.msk.f32.gmra.mrb[8].mxu0 %vm580_vm2, %v573_v24  ;;  %v575_v0 = vmax.f32 %v565_v25, 0.0 }
 0x4cb   :  { %v574_v28 = vmax.f32 %v560_v27, 0.0 }
 0x4cd   :  { %1979 = vmatprep.mubr.msk.f32.mxu0 %vm580_vm2, %v574_v28 }
 0x4ce   :  { %1980 = vmatmul.mubr.msk.f32.gmra.mrb[10].mxu0 %vm580_vm2, %v575_v0 }
 0x595   :  { %v1972_v31 = vpop.f32.mrb[4].mxu0 }
 0x596   :  { %v677_v6 = vadd.f32 %v1972_v31, %v1800_v29  ;;  %v671_v32 = vpop.f32.mrb[5].mxu0 }
 0x597   :  { %v672_v33 = vadd.f32 %v1800_v29, %v671_v32 }
 0x598   :  { %v743_v35 = vadd.f32 %v721_v30, %v677_v6 }
 0x599   :  { %v1975_v36 = vpop.f32.mrb[6].mxu0  ;;  %v742_v37 = vadd.f32 %v719_v1, %v672_v33 }
 0x59a   :  { %v687_v39 = vadd.f32 %v1975_v36, %v1800_v29  ;;  %v681_v40 = vpop.f32.mrb[7].mxu0  ;;  %v753_v41 = vsel %vm438_vm1, %v743_v35, 0.0 }
 0x59b   :  { %v682_v43 = vadd.f32 %v1800_v29, %v681_v40  ;;  %754 = vadd.xlane.f32.xlu1 %v753_v41  ;;  %v750_v44 = vsel %vm438_vm1, %v742_v37, 0.0 }
 0x59c   :  { %751 = vadd.xlane.f32.xlu0 %v750_v44  ;;  %v745_v51 = vadd.f32 %v725_v38, %v687_v39 }
 0x59d   :  { %v1978_v45 = vpop.f32.mrb[8].mxu0  ;;  %v744_v46 = vadd.f32 %v723_v34, %v682_v43 }
 0x59e   :  { %v691_v50 = vpop.f32.mrb[9].mxu0  ;;  %v697_v52 = vadd.f32 %v1978_v45, %v1800_v29  ;;  %v759_v61 = vsel %vm438_vm1, %v745_v51, 0.0  ;;  %v879_v45 = vld [vmem:[%s2732_s1 + $0x80] sm:$0xff] }
 0x59f   :  { %v692_v53 = vadd.f32 %v1800_v29, %v691_v50  ;;  %v756_v54 = vsel %vm438_vm1, %v744_v46, 0.0  ;;  %v881_v50 = vld [vmem:[%s2732_s1 + $0x90] sm:$0xff] }
 0x5a0   :  { %757 = vadd.xlane.f32.xlu0 %v756_v54  ;;  %v747_v3 = vadd.f32 %v729_v55, %v697_v52  ;;  %v885_v54 = vld [vmem:[%s2732_s1 + $0xb0] sm:$0xff] }
 0x5a1   :  { %v1981_v58 = vpop.f32.mrb[10].mxu0  ;;  %v746_v59 = vadd.f32 %v727_v47, %v692_v53  ;;  %v884_v53 = vld [vmem:[%s2732_s1 + $0xa8] sm:$0xff] }
 0x5a2   :  { %v701_v60 = vpop.f32.mrb[11].mxu0  ;;  %v707_v62 = vadd.f32 %v1981_v58, %v1800_v29  ;;  %v765_v9 = vsel %vm438_vm1, %v747_v3, 0.0  ;;  %v2082_v55 = vpack.c.bf16 %v885_v54, %v884_v53 }
 0x5a3   :  { %v702_v63 = vadd.f32 %v1800_v29, %v701_v60  ;;  %v762_v2 = vsel %vm438_vm1, %v746_v59, 0.0 }
 0x5a4   :  { %763 = vadd.xlane.f32.xlu1 %v762_v2  ;;  %760 = vadd.xlane.f32.xlu0 %v759_v61  ;;  %v749_v10 = vadd.f32 %v733_v7, %v707_v62 }
 0x5a5   :  { %v748_v5 = vadd.f32 %v731_v4, %v702_v63  ;;  %2083 = vmatprep.subr.bf16.mxu0 %v2082_v55 }
 0x5a6   :  { %v771_v42 = vsel %vm438_vm1, %v749_v10, 0.0  ;;  %2085 = vmatpush3.bf16.msra.mxu0 %v2082_v55 }
 0x5a7   :  { %v768_v8 = vsel %vm438_vm1, %v748_v5, 0.0 }
 0x5a8   :  { %769 = vadd.xlane.f32.xlu1 %v768_v8  ;;  %766 = vadd.xlane.f32.xlu0 %v765_v9 }
 0x5ac   :  { %772 = vadd.xlane.f32.xlu0 %v771_v42 }
 0x628   :  { %v755_v11 = vpop.xlane.xlu1 %754 }
 0x629   :  { %v776_v12 = vmul.f32 0.03125, %v755_v11  ;;  %v752_v13 = vpop.xlane.xlu0 %751 }
 0x62a   :  { %v775_v14 = vmul.f32 0.03125, %v752_v13 }
 0x62b   :  { %v2401_v15 = vsub.f32 %v743_v35, %v776_v12 }
 0x62c   :  { %v2403_v48 = vsub.f32 %v742_v37, %v775_v14 }
 0x62d   :  { %v758_v49 = vpop.xlane.xlu0 %757  ;;  %v792_v16 = vmul.f32 %v2401_v15, %v2401_v15 }
 0x62e   :  { %v777_v17 = vmul.f32 0.03125, %v758_v49  ;;  %v791_v18 = vmul.f32 %v2403_v48, %v2403_v48 }
 0x62f   :  { %v802_v56 = vsel %vm438_vm1, %v792_v16, 0.0  ;;  %v1809_v16 = vld [vmem:[%s2732_s1 + $0x70] ss:$0 sm:$0xff] }
 0x630   :  { %v2410_v19 = vsub.f32 %v744_v46, %v777_v17  ;;  %803 = vadd.xlane.f32.xlu0 %v802_v56  ;;  %v799_v57 = vsel %vm438_vm1, %v791_v18, 0.0  ;;  %v880_v46 = vld [vmem:[%s2732_s1 + $0x88] sm:$0xff] }
 0x631   :  { %800 = vadd.xlane.f32.xlu1 %v799_v57  ;;  %v761_v20 = vpop.xlane.xlu0 %760  ;;  %v764_v21 = vpop.xlane.xlu1 %763  ;;  %v2074_v47 = vpack.c.bf16 %v880_v46, %v879_v45 }
 0x632   :  { %v778_v22 = vmul.f32 0.03125, %v761_v20  ;;  %v779_v23 = vmul.f32 0.03125, %v764_v21  ;;  %v793_v24 = vmul.f32 %v2410_v19, %v2410_v19 }
 0x633   :  { %2075 = vmatprep.subr.bf16.mxu1 %v2074_v47 }
 0x634   :  { %v2415_v25 = vsub.f32 %v745_v51, %v778_v22  ;;  %v2417_v26 = vsub.f32 %v746_v59, %v779_v23  ;;  %v805_v27 = vsel %vm438_vm1, %v793_v24, 0.0  ;;  %2077 = vmatpush3.bf16.msra.mxu1 %v2074_v47  ;;  %v882_v51 = vld [vmem:[%s2732_s1 + $0x98] sm:$0xff] }
 0x635   :  { %806 = vadd.xlane.f32.xlu1 %v805_v27  ;;  %v767_v28 = vpop.xlane.xlu0 %766  ;;  %v770_v0 = vpop.xlane.xlu1 %769  ;;  %v2078_v52 = vpack.c.bf16 %v882_v51, %v881_v50  ;;  %v1810_v22 = vld [vmem:[%s2732_s1 + $0x78] ss:$0 sm:$0xff] }
 0x636   :  { %v780_v1 = vmul.f32 0.03125, %v767_v28  ;;  %v781_v29 = vmul.f32 0.03125, %v770_v0  ;;  %v794_v30 = vmul.f32 %v2415_v25, %v2415_v25  ;;  %v795_v31 = vmul.f32 %v2417_v26, %v2417_v26 }
 0x637   :  { %2079 = vmatprep.subr.bf16.mxu1 %v2078_v52 }
 0x638   :  { %v2424_v6 = vsub.f32 %v747_v3, %v780_v1  ;;  %v2426_v32 = vsub.f32 %v748_v5, %v781_v29  ;;  %v808_v33 = vsel %vm438_vm1, %v794_v30, 0.0  ;;  %v811_v34 = vsel %vm438_vm1, %v795_v31, 0.0  ;;  %2081 = vmatpush3.bf16.msra.mxu1 %v2078_v52  ;;  %v887_v52 = vld [vmem:[%s2732_s1 + $0xc0] sm:$0xff] }
 0x639   :  { %v773_v35 = vpop.xlane.xlu0 %772  ;;  %809 = vadd.xlane.f32.xlu0 %v808_v33  ;;  %812 = vadd.xlane.f32.xlu1 %v811_v34 }
 0x63a   :  { %v782_v36 = vmul.f32 0.03125, %v773_v35  ;;  %v796_v37 = vmul.f32 %v2424_v6, %v2424_v6  ;;  %v797_v38 = vmul.f32 %v2426_v32, %v2426_v32 }
 0x63c   :  { %v2434_v39 = vsub.f32 %v749_v10, %v782_v36  ;;  %v814_v40 = vsel %vm438_vm1, %v796_v37, 0.0  ;;  %v817_v41 = vsel %vm438_vm1, %v797_v38, 0.0 }
 0x63d   :  { %815 = vadd.xlane.f32.xlu0 %v814_v40  ;;  %818 = vadd.xlane.f32.xlu1 %v817_v41 }
 0x63e   :  { %v798_v43 = vmul.f32 %v2434_v39, %v2434_v39 }
 0x640   :  { %v820_v44 = vsel %vm438_vm1, %v798_v43, 0.0 }
 0x641   :  { %821 = vadd.xlane.f32.xlu0 %v820_v44 }
 0x6bd   :  { %v804_v58 = vpop.xlane.xlu0 %803 }
 0x6be   :  { %v824_v59 = vmul.f32 0.03125, %v804_v58  ;;  %v801_v60 = vpop.xlane.xlu1 %800 }
 0x6bf   :  { %v823_v61 = vmul.f32 0.03125, %v801_v60 }
 0x6c0   :  { %v832_v62 = vadd.f32 1e-05, %v824_v59 }
 0x6c1   :  { %v831_v63 = vadd.f32 1e-05, %v823_v61 }
 0x6c2   :  { %2128 = vrsqrt.f32 %v832_v62  ;;  %v807_v2 = vpop.xlane.xlu1 %806 }
 0x6c3   :  { %2130 = vrsqrt.f32 %v831_v63  ;;  %v825_v3 = vmul.f32 0.03125, %v807_v2 }
 0x6c5   :  { %v833_v4 = vadd.f32 1e-05, %v825_v3 }
 0x6c6   :  { %v810_v5 = vpop.xlane.xlu0 %809  ;;  %v813_v7 = vpop.xlane.xlu1 %812 }
 0x6c7   :  { %2132 = vrsqrt.f32 %v833_v4  ;;  %v826_v8 = vmul.f32 0.03125, %v810_v5  ;;  %v827_v9 = vmul.f32 0.03125, %v813_v7  ;;  %v889_v4 = vld [vmem:[%s2732_s1 + $0xd0] sm:$0xff]  ;;  %v890_v5 = vld [vmem:[%s2732_s1 + $0xd8] sm:$0xff] }
 0x6c8   :  { %v2090_v7 = vpack.c.bf16 %v890_v5, %v889_v4 }
 0x6c9   :  { %v834_v10 = vadd.f32 1e-05, %v826_v8  ;;  %v835_v42 = vadd.f32 1e-05, %v827_v9 }
 0x6ca   :  { %v816_v11 = vpop.xlane.xlu0 %815  ;;  %v819_v12 = vpop.xlane.xlu1 %818  ;;  %2091 = vmatprep.subr.bf16.mxu1 %v2090_v7 }
 0x6cb   :  { %2134 = vrsqrt.f32 %v834_v10  ;;  %v828_v13 = vmul.f32 0.03125, %v816_v11  ;;  %v829_v14 = vmul.f32 0.03125, %v819_v12 }
 0x6cc   :  { %v2129_v49 = vpop.eup %2128  ;;  %2136 = vrsqrt.f32 %v835_v42 }
 0x6cd   :  { %v2131_v17 = vpop.eup %2130  ;;  %v848_v18 = vmul.f32 %v2129_v49, %v2401_v15  ;;  %v836_v56 = vadd.f32 1e-05, %v828_v13  ;;  %v837_v57 = vadd.f32 1e-05, %v829_v14 }
 0x6ce   :  { %v822_v20 = vpop.xlane.xlu0 %821  ;;  %v847_v21 = vmul.f32 %v2131_v17, %v2403_v48 }
 0x6cf   :  { %v860_v23 = vmul.f32 %v1809_v16, %v848_v18  ;;  %2138 = vrsqrt.f32 %v836_v56  ;;  %v830_v24 = vmul.f32 0.03125, %v822_v20  ;;  %v1820_v20 = vld [vmem:[%s2732_s1 + $0xc8] ss:$0 sm:$0xff] }
 0x6d0   :  { %2140 = vrsqrt.f32 %v837_v57  ;;  %v859_v27 = vmul.f32 %v1809_v16, %v847_v21 }
 0x6d1   :  { %v2133_v28 = vpop.eup %2132  ;;  %v838_v0 = vadd.f32 1e-05, %v830_v24  ;;  %v872_v15 = vadd.f32 %v1810_v22, %v860_v23 }
 0x6d2   :  { %v871_v1 = vadd.f32 %v1810_v22, %v859_v27  ;;  %v849_v29 = vmul.f32 %v2133_v28, %v2410_v19 }
 0x6d3   :  { %2142 = vrsqrt.f32 %v838_v0 }
 0x6d4   :  { %1990 = vmatprep.mubr.msk.f32.mxu1 %vm438_vm1, %v871_v1  ;;  %v861_v30 = vmul.f32 %v1809_v16, %v849_v29 }
 0x6d5   :  { %v2135_v48 = vpop.eup %2134  ;;  %1991 = vmatmul.mubr.msk.f32.vlgmr.msra.gmra.mrb[12].mxu1 %vm438_vm1, %v872_v15 }
 0x6d6   :  { %v2137_v31 = vpop.eup %2136  ;;  %v873_v33 = vadd.f32 %v1810_v22, %v861_v30  ;;  %v850_v34 = vmul.f32 %v2135_v48, %v2415_v25  ;;  %2093 = vmatpush3.bf16.msra.mxu1 %v2090_v7 }
 0x6d7   :  { %v851_v35 = vmul.f32 %v2137_v31, %v2417_v26 }
 0x6d8   :  { %1993 = vmatprep.mubr.msk.f32.mxu1 %vm438_vm1, %v873_v33  ;;  %v862_v36 = vmul.f32 %v1809_v16, %v850_v34 }
 0x6d9   :  { %v2139_v37 = vpop.eup %2138  ;;  %v863_v38 = vmul.f32 %v1809_v16, %v851_v35 }
 0x6da   :  { %v2141_v19 = vpop.eup %2140  ;;  %v874_v40 = vadd.f32 %v1810_v22, %v862_v36  ;;  %v852_v41 = vmul.f32 %v2139_v37, %v2424_v6 }
 0x6db   :  { %v875_v43 = vadd.f32 %v1810_v22, %v863_v38  ;;  %v853_v44 = vmul.f32 %v2141_v19, %v2426_v32  ;;  %v886_v32 = vld [vmem:[%s2732_s1 + $0xb8] sm:$0xff] }
 0x6dc   :  { %1994 = vmatmul.mubr.msk.f32.gmra.mrb[14].mxu1 %vm438_vm1, %v874_v40  ;;  %v864_v45 = vmul.f32 %v1809_v16, %v852_v41  ;;  %v2086_v53 = vpack.c.bf16 %v887_v52, %v886_v32 }
 0x6dd   :  { %v2143_v46 = vpop.eup %2142  ;;  %1996 = vmatprep.mubr.msk.f32.mxu1 %vm438_vm1, %v875_v43  ;;  %v865_v25 = vmul.f32 %v1809_v16, %v853_v44 }
 0x6de   :  { %v876_v26 = vadd.f32 %v1810_v22, %v864_v45  ;;  %v854_v47 = vmul.f32 %v2143_v46, %v2434_v39  ;;  %2087 = vmatprep.subr.bf16.mxu0 %v2086_v53  ;;  %v1811_v39 = vld [vmem:[%s2732_s1 + $0xa0] ss:$0 sm:$0xff] }
 0x6df   :  { %v877_v50 = vadd.f32 %v1810_v22, %v865_v25  ;;  %2089 = vmatpush3.bf16.msra.mxu0 %v2086_v53  ;;  %v1829_v46 = vld [vmem:[%s2732_s1 + $0xe0] ss:$0 sm:$0xff] }
 0x6e0   :  { %1997 = vmatmul.mubr.msk.f32.gmra.mrb[16].mxu1 %vm438_vm1, %v876_v26  ;;  %v866_v51 = vmul.f32 %v1809_v16, %v854_v47 }
 0x6e1   :  { %1999 = vmatprep.mubr.msk.f32.mxu1 %vm438_vm1, %v877_v50 }
 0x6e2   :  { %v878_v6 = vadd.f32 %v1810_v22, %v866_v51 }
 0x6e4   :  { %2000 = vmatmul.mubr.msk.f32.gmra.mrb[18].mxu1 %vm438_vm1, %v878_v6 }
 0x7a8   :  { %v1992_v54 = vpop.f32.mrb[12].mxu1 }
 0x7a9   :  { %v994_v55 = vadd.f32 %v1992_v54, %v1811_v39  ;;  %v988_v58 = vpop.f32.mrb[13].mxu1 }
 0x7aa   :  { %v989_v59 = vadd.f32 %v1811_v39, %v988_v58 }
 0x7ab   :  { %1319 = vrot.lane.b32.xlu0 %v994_v55, %s2186_s23  ;;  %v1028_v61 = vmax.f32 %v994_v55, 0.0 }
 0x7ac   :  { %v1027_v60 = vmax.f32 %v989_v59, 0.0  ;;  %1317 = vrot.lane.b32.xlu1 %v989_v59, %s2186_s23 }
 0x7ae   :  { %2010 = vmatprep.mubr.msk.f32.mxu0 %vm438_vm1, %v1027_v60 }
 0x7af   :  { %v1995_v62 = vpop.f32.mrb[14].mxu1  ;;  %2011 = vmatmul.mubr.msk.f32.vlgmr.msra.gmra.mrb[12].mxu0 %vm438_vm1, %v1028_v61 }
 0x7b0   :  { %v1004_v63 = vadd.f32 %v1995_v62, %v1811_v39  ;;  %v998_v2 = vpop.f32.mrb[15].mxu1 }
 0x7b1   :  { %v999_v3 = vadd.f32 %v1811_v39, %v998_v2 }
 0x7b2   :  { %v1030_v10 = vmax.f32 %v1004_v63, 0.0 }
 0x7b3   :  { %v1029_v8 = vmax.f32 %v999_v3, 0.0  ;;  %1321 = vrot.lane.b32.xlu1 %v999_v3, %s2186_s23  ;;  %v1998_v9 = vpop.f32.mrb[16].mxu1 }
 0x7b4   :  { %v1014_v42 = vadd.f32 %v1998_v9, %v1811_v39  ;;  %v1008_v11 = vpop.f32.mrb[17].mxu1 }
 0x7b5   :  { %v1009_v12 = vadd.f32 %v1811_v39, %v1008_v11  ;;  %2013 = vmatprep.mubr.msk.f32.mxu0 %vm438_vm1, %v1029_v8 }
 0x7b6   :  { %2014 = vmatmul.mubr.msk.f32.gmra.mrb[14].mxu0 %vm438_vm1, %v1030_v10  ;;  %v1032_v49 = vmax.f32 %v1014_v42, 0.0 }
 0x7b7   :  { %v1031_v13 = vmax.f32 %v1009_v12, 0.0  ;;  %1323 = vrot.lane.b32.xlu1 %v1004_v63, %s2186_s23  ;;  %1325 = vrot.lane.b32.xlu0 %v1009_v12, %s2186_s23  ;;  %v2001_v14 = vpop.f32.mrb[18].mxu1 }
 0x7b8   :  { %v1024_v16 = vadd.f32 %v2001_v14, %v1811_v39  ;;  %v1018_v17 = vpop.f32.mrb[19].mxu1 }
 0x7b9   :  { %v1019_v18 = vadd.f32 %v1811_v39, %v1018_v17  ;;  %2016 = vmatprep.mubr.msk.f32.mxu0 %vm438_vm1, %v1031_v13 }
 0x7ba   :  { %2017 = vmatmul.mubr.msk.f32.gmra.mrb[16].mxu0 %vm438_vm1, %v1032_v49  ;;  %v1034_v57 = vmax.f32 %v1024_v16, 0.0 }
 0x7bb   :  { %v1033_v56 = vmax.f32 %v1019_v18, 0.0  ;;  %1327 = vrot.lane.b32.xlu1 %v1014_v42, %s2186_s23  ;;  %1329 = vrot.lane.b32.xlu0 %v1019_v18, %s2186_s23 }
 0x7bd   :  { %2019 = vmatprep.mubr.msk.f32.mxu0 %vm438_vm1, %v1033_v56 }
 0x7be   :  { %2020 = vmatmul.mubr.msk.f32.gmra.mrb[18].mxu0 %vm438_vm1, %v1034_v57 }
 0x7bf   :  { %1331 = vrot.lane.b32.xlu1 %v1024_v16, %s2186_s23 }
 0x81d   :  { %v1320_v50 = vpop.permute.xlu0 %1319 }
 0x81e   :  { %v1318_v45 = vpop.permute.xlu1 %1317 }
 0x825   :  { %v1322_v51 = vpop.permute.xlu1 %1321 }
 0x829   :  { %v1324_v55 = vpop.permute.xlu1 %1323  ;;  %v1326_v63 = vpop.permute.xlu0 %1325 }
 0x82d   :  { %v1328_v8 = vpop.permute.xlu1 %1327  ;;  %v1330_v16 = vpop.permute.xlu0 %1329 }
 0x831   :  { %v1332_v18 = vpop.permute.xlu1 %1331 }
 0x882   :  { %v2012_v21 = vpop.f32.mrb[12].mxu0 }
 0x883   :  { %v1135_v22 = vadd.f32 %v2012_v21, %v1820_v20  ;;  %v1129_v23 = vpop.f32.mrb[13].mxu0 }
 0x884   :  { %v1130_v24 = vadd.f32 %v1820_v20, %v1129_v23 }
 0x885   :  { %v1169_v28 = vmax.f32 %v1135_v22, 0.0 }
 0x886   :  { %v1168_v27 = vmax.f32 %v1130_v24, 0.0 }
 0x888   :  { %2026 = vmatprep.mubr.msk.f32.mxu1 %vm580_vm2, %v1168_v27 }
 0x889   :  { %v2015_v0 = vpop.f32.mrb[14].mxu0  ;;  %2027 = vmatmul.mubr.msk.f32.vlgmr.msra.gmra.mrb[20].mxu1 %vm580_vm2, %v1169_v28 }
 0x88a   :  { %v1145_v1 = vadd.f32 %v2015_v0, %v1820_v20  ;;  %v1139_v29 = vpop.f32.mrb[15].mxu0 }
 0x88b   :  { %v1140_v15 = vadd.f32 %v1820_v20, %v1139_v29 }
 0x88c   :  { %v1171_v31 = vmax.f32 %v1145_v1, 0.0 }
 0x88d   :  { %v1170_v30 = vmax.f32 %v1140_v15, 0.0  ;;  %v2018_v48 = vpop.f32.mrb[16].mxu0 }
 0x88e   :  { %v1155_v33 = vadd.f32 %v2018_v48, %v1820_v20  ;;  %v1149_v34 = vpop.f32.mrb[17].mxu0 }
 0x88f   :  { %v1150_v35 = vadd.f32 %v1820_v20, %v1149_v34  ;;  %2029 = vmatprep.mubr.msk.f32.mxu1 %vm580_vm2, %v1170_v30 }
 0x890   :  { %2030 = vmatmul.mubr.msk.f32.gmra.mrb[22].mxu1 %vm580_vm2, %v1171_v31  ;;  %v1173_v38 = vmax.f32 %v1155_v33, 0.0 }
 0x891   :  { %v1172_v36 = vmax.f32 %v1150_v35, 0.0  ;;  %v2021_v37 = vpop.f32.mrb[18].mxu0 }
 0x892   :  { %v1165_v19 = vadd.f32 %v2021_v37, %v1820_v20  ;;  %v1159_v40 = vpop.f32.mrb[19].mxu0 }
 0x893   :  { %v1160_v41 = vadd.f32 %v1820_v20, %v1159_v40  ;;  %2032 = vmatprep.mubr.msk.f32.mxu1 %vm580_vm2, %v1172_v36 }
 0x894   :  { %2033 = vmatmul.mubr.msk.f32.gmra.mrb[24].mxu1 %vm580_vm2, %v1173_v38  ;;  %v1175_v44 = vmax.f32 %v1165_v19, 0.0 }
 0x895   :  { %v1174_v43 = vmax.f32 %v1160_v41, 0.0 }
 0x897   :  { %2035 = vmatprep.mubr.msk.f32.mxu1 %vm580_vm2, %v1174_v43 }
 0x898   :  { %2036 = vmatmul.mubr.msk.f32.gmra.mrb[26].mxu1 %vm580_vm2, %v1175_v44 }
 0x95c   :  { %v2028_v25 = vpop.f32.mrb[20].mxu1 }
 0x95d   :  { %v1276_v26 = vadd.f32 %v2028_v25, %v1829_v46  ;;  %v1270_v47 = vpop.f32.mrb[21].mxu1 }
 0x95e   :  { %v1271_v6 = vadd.f32 %v1829_v46, %v1270_v47 }
 0x95f   :  { %v1342_v32 = vadd.f32 %v1320_v50, %v1276_v26 }
 0x960   :  { %v1341_v52 = vadd.f32 %v1318_v45, %v1271_v6 }
 0x961   :  { %v1352_v53 = vsel %vm438_vm1, %v1342_v32, 0.0 }
 0x962   :  { %1353 = vadd.xlane.f32.xlu1 %v1352_v53  ;;  %v1349_v39 = vsel %vm438_vm1, %v1341_v52, 0.0 }
 0x963   :  { %v2031_v54 = vpop.f32.mrb[22].mxu1  ;;  %1350 = vadd.xlane.f32.xlu0 %v1349_v39 }
 0x964   :  { %v1286_v58 = vadd.f32 %v2031_v54, %v1829_v46  ;;  %v1280_v59 = vpop.f32.mrb[23].mxu1 }
 0x965   :  { %v1281_v60 = vadd.f32 %v1829_v46, %v1280_v59 }
 0x966   :  { %v1344_v3 = vadd.f32 %v1324_v55, %v1286_v58 }
 0x967   :  { %v2034_v61 = vpop.f32.mrb[24].mxu1  ;;  %v1343_v62 = vadd.f32 %v1322_v51, %v1281_v60 }
 0x968   :  { %v1290_v2 = vpop.f32.mrb[25].mxu1  ;;  %v1296_v4 = vadd.f32 %v2034_v61, %v1829_v46  ;;  %v1358_v11 = vsel %vm438_vm1, %v1344_v3, 0.0  ;;  %v1477_v61 = vld [vmem:[%s2732_s1 + $0xf8] sm:$0xff] }
 0x969   :  { %v1291_v5 = vadd.f32 %v1829_v46, %v1290_v2  ;;  %v1355_v7 = vsel %vm438_vm1, %v1343_v62, 0.0  ;;  %v1479_v2 = vld [vmem:[%s2732_s1 + $0x108] sm:$0xff] }
 0x96a   :  { %1356 = vadd.xlane.f32.xlu0 %v1355_v7  ;;  %v1346_v49 = vadd.f32 %v1328_v8, %v1296_v4 }
 0x96b   :  { %v2037_v9 = vpop.f32.mrb[26].mxu1  ;;  %v1345_v10 = vadd.f32 %v1326_v63, %v1291_v5 }
 0x96c   :  { %v1300_v42 = vpop.f32.mrb[27].mxu1  ;;  %v1306_v12 = vadd.f32 %v2037_v9, %v1829_v46  ;;  %v1364_v57 = vsel %vm438_vm1, %v1346_v49, 0.0 }
 0x96d   :  { %v1301_v13 = vadd.f32 %v1829_v46, %v1300_v42  ;;  %v1361_v14 = vsel %vm438_vm1, %v1345_v10, 0.0 }
 0x96e   :  { %1362 = vadd.xlane.f32.xlu1 %v1361_v14  ;;  %1359 = vadd.xlane.f32.xlu0 %v1358_v11  ;;  %v1348_v20 = vadd.f32 %v1332_v18, %v1306_v12 }
 0x96f   :  { %v1347_v17 = vadd.f32 %v1330_v16, %v1301_v13 }
 0x970   :  { %v1370_v21 = vsel %vm438_vm1, %v1348_v20, 0.0 }
 0x971   :  { %v1367_v56 = vsel %vm438_vm1, %v1347_v17, 0.0 }
 0x972   :  { %1368 = vadd.xlane.f32.xlu1 %v1367_v56  ;;  %1365 = vadd.xlane.f32.xlu0 %v1364_v57  ;;  %v1838_v56 = vld [vmem:[%s2732_s1 + $0xe8] ss:$0 sm:$0xff] }
 0x976   :  { %1371 = vadd.xlane.f32.xlu0 %v1370_v21 }
 0x9ef   :  { %v1354_v22 = vpop.xlane.xlu1 %1353 }
 0x9f0   :  { %v1374_v23 = vmul.f32 0.03125, %v1354_v22  ;;  %v1351_v24 = vpop.xlane.xlu0 %1350 }
 0x9f1   :  { %v1373_v27 = vmul.f32 0.03125, %v1351_v24 }
 0x9f2   :  { %v2534_v28 = vsub.f32 %v1342_v32, %v1374_v23 }
 0x9f3   :  { %v2536_v0 = vsub.f32 %v1341_v52, %v1373_v27 }
 0x9f4   :  { %v1390_v1 = vmul.f32 %v2534_v28, %v2534_v28 }
 0x9f5   :  { %v1389_v29 = vmul.f32 %v2536_v0, %v2536_v0 }
 0x9f6   :  { %v1400_v15 = vsel %vm438_vm1, %v1390_v1, 0.0 }
 0x9f7   :  { %v1357_v30 = vpop.xlane.xlu0 %1356  ;;  %1401 = vadd.xlane.f32.xlu0 %v1400_v15  ;;  %v1397_v48 = vsel %vm438_vm1, %v1389_v29, 0.0  ;;  %v1839_v15 = vld [vmem:[%s2732_s1 + $0xf0] ss:$0 sm:$0xff] }
 0x9f8   :  { %v1375_v31 = vmul.f32 0.03125, %v1357_v30  ;;  %1398 = vadd.xlane.f32.xlu1 %v1397_v48 }
 0x9fa   :  { %v2544_v33 = vsub.f32 %v1343_v62, %v1375_v31  ;;  %v1478_v62 = vld [vmem:[%s2732_s1 + $0x100] sm:$0xff] }
 0x9fb   :  { %v1360_v34 = vpop.xlane.xlu0 %1359  ;;  %v1363_v35 = vpop.xlane.xlu1 %1362  ;;  %v2094_v63 = vpack.c.bf16 %v1478_v62, %v1477_v61 }
 0x9fc   :  { %v1376_v36 = vmul.f32 0.03125, %v1360_v34  ;;  %v1377_v37 = vmul.f32 0.03125, %v1363_v35  ;;  %v1391_v38 = vmul.f32 %v2544_v33, %v2544_v33 }
 0x9fd   :  { %2095 = vmatprep.subr.bf16.mxu0 %v2094_v63 }
 0x9fe   :  { %v2548_v19 = vsub.f32 %v1344_v3, %v1376_v36  ;;  %v2550_v40 = vsub.f32 %v1345_v10, %v1377_v37  ;;  %v1403_v41 = vsel %vm438_vm1, %v1391_v38, 0.0  ;;  %2097 = vmatpush3.bf16.msra.mxu0 %v2094_v63  ;;  %v1480_v3 = vld [vmem:[%s2732_s1 + $0x110] sm:$0xff] }
 0x9ff   :  { %1404 = vadd.xlane.f32.xlu1 %v1403_v41  ;;  %v1366_v43 = vpop.xlane.xlu0 %1365  ;;  %v1369_v44 = vpop.xlane.xlu1 %1368  ;;  %v2098_v4 = vpack.c.bf16 %v1480_v3, %v1479_v2 }
 0xa00   :  { %v1378_v45 = vmul.f32 0.03125, %v1366_v43  ;;  %v1379_v46 = vmul.f32 0.03125, %v1369_v44  ;;  %v1392_v25 = vmul.f32 %v2548_v19, %v2548_v19  ;;  %v1393_v26 = vmul.f32 %v2550_v40, %v2550_v40 }
 0xa01   :  { %2099 = vmatprep.subr.bf16.mxu0 %v2098_v4 }
 0xa02   :  { %v2557_v47 = vsub.f32 %v1346_v49, %v1378_v45  ;;  %v2559_v50 = vsub.f32 %v1347_v17, %v1379_v46  ;;  %v1406_v51 = vsel %vm438_vm1, %v1392_v25, 0.0  ;;  %v1409_v6 = vsel %vm438_vm1, %v1393_v26, 0.0  ;;  %2101 = vmatpush3.bf16.msra.mxu0 %v2098_v4 }
 0xa03   :  { %v1372_v32 = vpop.xlane.xlu0 %1371  ;;  %1407 = vadd.xlane.f32.xlu0 %v1406_v51  ;;  %1410 = vadd.xlane.f32.xlu1 %v1409_v6 }
 0xa04   :  { %v1380_v52 = vmul.f32 0.03125, %v1372_v32  ;;  %v1394_v53 = vmul.f32 %v2557_v47, %v2557_v47  ;;  %v1395_v39 = vmul.f32 %v2559_v50, %v2559_v50 }
 0xa06   :  { %v2567_v54 = vsub.f32 %v1348_v20, %v1380_v52  ;;  %v1412_v55 = vsel %vm438_vm1, %v1394_v53, 0.0  ;;  %v1415_v58 = vsel %vm438_vm1, %v1395_v39, 0.0 }
 0xa07   :  { %1413 = vadd.xlane.f32.xlu0 %v1412_v55  ;;  %1416 = vadd.xlane.f32.xlu1 %v1415_v58 }
 0xa08   :  { %v1396_v59 = vmul.f32 %v2567_v54, %v2567_v54 }
 0xa0a   :  { %v1418_v60 = vsel %vm438_vm1, %v1396_v59, 0.0 }
 0xa0b   :  { %1419 = vadd.xlane.f32.xlu0 %v1418_v60 }
 0xa84   :  { %v1402_v5 = vpop.xlane.xlu0 %1401 }
 0xa85   :  { %v1422_v7 = vmul.f32 0.03125, %v1402_v5  ;;  %v1399_v8 = vpop.xlane.xlu1 %1398 }
 0xa86   :  { %v1421_v9 = vmul.f32 0.03125, %v1399_v8 }
 0xa87   :  { %v1430_v10 = vadd.f32 1e-05, %v1422_v7 }
 0xa88   :  { %v1429_v42 = vadd.f32 1e-05, %v1421_v9 }
 0xa89   :  { %2144 = vrsqrt.f32 %v1430_v10 }
 0xa8a   :  { %2146 = vrsqrt.f32 %v1429_v42 }
 0xa8c   :  { %v1405_v11 = vpop.xlane.xlu1 %1404 }
 0xa8d   :  { %v1423_v12 = vmul.f32 0.03125, %v1405_v11 }
 0xa8f   :  { %v1431_v13 = vadd.f32 1e-05, %v1423_v12 }
 0xa90   :  { %v1408_v14 = vpop.xlane.xlu0 %1407  ;;  %v1411_v49 = vpop.xlane.xlu1 %1410 }
 0xa91   :  { %2148 = vrsqrt.f32 %v1431_v13  ;;  %v1424_v16 = vmul.f32 0.03125, %v1408_v14  ;;  %v1425_v17 = vmul.f32 0.03125, %v1411_v49 }
 0xa93   :  { %v2145_v18 = vpop.eup %2144  ;;  %v1432_v57 = vadd.f32 1e-05, %v1424_v16  ;;  %v1433_v20 = vadd.f32 1e-05, %v1425_v17 }
 0xa94   :  { %v2147_v21 = vpop.eup %2146  ;;  %v1446_v22 = vmul.f32 %v2145_v18, %v2534_v28  ;;  %v1414_v23 = vpop.xlane.xlu0 %1413 }
 0xa95   :  { %v1417_v24 = vpop.xlane.xlu1 %1416  ;;  %2150 = vrsqrt.f32 %v1432_v57  ;;  %v1426_v27 = vmul.f32 0.03125, %v1414_v23  ;;  %v1445_v29 = vmul.f32 %v2147_v21, %v2536_v0 }
 0xa96   :  { %v1427_v1 = vmul.f32 0.03125, %v1417_v24  ;;  %v1458_v30 = vmul.f32 %v1838_v56, %v1446_v22  ;;  %2152 = vrsqrt.f32 %v1433_v20 }
 0xa97   :  { %v1434_v48 = vadd.f32 1e-05, %v1426_v27  ;;  %v1457_v34 = vmul.f32 %v1838_v56, %v1445_v29 }
 0xa98   :  { %v1435_v31 = vadd.f32 1e-05, %v1427_v1  ;;  %v1420_v35 = vpop.xlane.xlu0 %1419  ;;  %v1470_v37 = vadd.f32 %v1839_v15, %v1458_v30 }
 0xa99   :  { %2154 = vrsqrt.f32 %v1434_v48  ;;  %v1428_v36 = vmul.f32 0.03125, %v1420_v35  ;;  %v1469_v28 = vadd.f32 %v1839_v15, %v1457_v34 }
 0xa9a   :  { %2156 = vrsqrt.f32 %v1435_v31 }
 0xa9b   :  { %v2149_v38 = vpop.eup %2148  ;;  %v1436_v41 = vadd.f32 1e-05, %v1428_v36  ;;  %2046 = vmatprep.mubr.msk.f32.mxu0 %vm438_vm1, %v1469_v28 }
 0xa9c   :  { %2047 = vmatmul.mubr.msk.f32.vlgmr.msra.gmra.mrb[20].mxu0 %vm438_vm1, %v1470_v37  ;;  %v1447_v0 = vmul.f32 %v2149_v38, %v2544_v33 }
 0xa9d   :  { %2158 = vrsqrt.f32 %v1436_v41 }
 0xa9e   :  { %v1459_v43 = vmul.f32 %v1838_v56, %v1447_v0 }
 0xa9f   :  { %v2151_v44 = vpop.eup %2150 }
 0xaa0   :  { %v2153_v45 = vpop.eup %2152  ;;  %v1471_v46 = vadd.f32 %v1839_v15, %v1459_v43  ;;  %v1448_v25 = vmul.f32 %v2151_v44, %v2548_v19 }
 0xaa1   :  { %v1449_v26 = vmul.f32 %v2153_v45, %v2550_v40 }
 0xaa2   :  { %2049 = vmatprep.mubr.msk.f32.mxu0 %vm438_vm1, %v1471_v46  ;;  %v1460_v51 = vmul.f32 %v1838_v56, %v1448_v25 }
 0xaa3   :  { %v2155_v6 = vpop.eup %2154  ;;  %v1461_v32 = vmul.f32 %v1838_v56, %v1449_v26 }
 0xaa4   :  { %v2157_v52 = vpop.eup %2156  ;;  %v1472_v53 = vadd.f32 %v1839_v15, %v1460_v51  ;;  %v1450_v39 = vmul.f32 %v2155_v6, %v2557_v47  ;;  %v2176_v51 = vld [vmem:[%s2731_s0] sm:$0xff] }
 0xaa5   :  { %v1473_v55 = vadd.f32 %v1839_v15, %v1461_v32  ;;  %v1451_v33 = vmul.f32 %v2157_v52, %v2559_v50  ;;  %v1840_v50 = vld [vmem:[%s2732_s1 + $0x118] ss:$0 sm:$0xff]  ;;  %s2188_s1 = smov 32   ;;  %v2177_v52 = vld [vmem:[%s2731_s0 + $0x8] sm:$0xff] }
 0xaa6   :  { %2050 = vmatmul.mubr.msk.f32.gmra.mrb[22].mxu0 %vm438_vm1, %v1472_v53  ;;  %v1462_v58 = vmul.f32 %v1838_v56, %v1450_v39 }
 0xaa7   :  { %v2159_v59 = vpop.eup %2158  ;;  %2052 = vmatprep.mubr.msk.f32.mxu0 %vm438_vm1, %v1473_v55  ;;  %v1463_v19 = vmul.f32 %v1838_v56, %v1451_v33 }
 0xaa8   :  { %v1474_v40 = vadd.f32 %v1839_v15, %v1462_v58  ;;  %v1452_v60 = vmul.f32 %v2159_v59, %v2567_v54  ;;  %v2178_v58 = vld [vmem:[%s2731_s0 + $0x18] sm:$0xff] }
 0xaa9   :  { %v1475_v61 = vadd.f32 %v1839_v15, %v1463_v19 }
 0xaaa   :  { %2053 = vmatmul.mubr.msk.f32.gmra.mrb[24].mxu0 %vm438_vm1, %v1474_v40  ;;  %v1464_v62 = vmul.f32 %v1838_v56, %v1452_v60  ;;  %v2179_v60 = vld [vmem:[%s2731_s0 + $0x10] sm:$0xff] }
 0xaab   :  { %2055 = vmatprep.mubr.msk.f32.mxu0 %vm438_vm1, %v1475_v61 }
 0xaac   :  { %v1476_v47 = vadd.f32 %v1839_v15, %v1464_v62 }
 0xaae   :  { %2056 = vmatmul.mubr.msk.f32.gmra.mrb[26].mxu0 %vm438_vm1, %v1476_v47 }
 0xb6f   :  { %v2048_v63 = vpop.f32.mrb[20].mxu0 }
 0xb70   :  { %v2611_v2 = vadd.f32 %v2048_v63, %v1840_v50  ;;  %v1576_v3 = vpop.f32.mrb[21].mxu0 }
 0xb71   :  { %v2613_v4 = vadd.f32 %v1840_v50, %v1576_v3 }
 0xb72   :  { %v1616_v54 = vmul.f32 0.5, %v2611_v2  ;;  %1689 = vrot.lane.b32.xlu1 %v2611_v2, %s2187_s16 }
 0xb73   :  { %v1615_v5 = vmul.f32 0.5, %v2613_v4  ;;  %1687 = vrot.lane.b32.xlu0 %v2613_v4, %s2187_s16 }
 0xb74   :  { %v1625_v8 = vmul.f32 1.442695, %v1616_v54  ;;  %v2181_v54 = vld [vmem:[%s2731_s0 + $0x28] sm:$0xff] }
 0xb75   :  { %v1623_v7 = vmul.f32 1.442695, %v1615_v5 }
 0xb77   :  { %2160 = vpow2.f32 %v1623_v7 }
 0xb78   :  { %2162 = vpow2.f32 %v1625_v8 }
 0xb79   :  { %v2051_v9 = vpop.f32.mrb[22].mxu0 }
 0xb7a   :  { %v2621_v10 = vadd.f32 %v2051_v9, %v1840_v50  ;;  %v1586_v42 = vpop.f32.mrb[23].mxu0 }
 0xb7b   :  { %v2623_v11 = vadd.f32 %v1840_v50, %v1586_v42  ;;  %v2182_v42 = vld [vmem:[%s2731_s0 + $0x30] sm:$0xff] }
 0xb7c   :  { %v1618_v12 = vmul.f32 0.5, %v2621_v10  ;;  %1693 = vrot.lane.b32.xlu1 %v2621_v10, %s2187_s16 }
 0xb7d   :  { %v1617_v13 = vmul.f32 0.5, %v2623_v11  ;;  %1691 = vrot.lane.b32.xlu0 %v2623_v11, %s2187_s16  ;;  %v2054_v14 = vpop.f32.mrb[24].mxu0 }
 0xb7e   :  { %v1629_v49 = vmul.f32 1.442695, %v1618_v12  ;;  %v2631_v16 = vadd.f32 %v2054_v14, %v1840_v50  ;;  %v1596_v17 = vpop.f32.mrb[25].mxu0 }
 0xb7f   :  { %v2633_v18 = vadd.f32 %v1840_v50, %v1596_v17  ;;  %v1627_v56 = vmul.f32 1.442695, %v1617_v13  ;;  %v2183_v17 = vld [vmem:[%s2731_s0 + $0x38] sm:$0xff] }
 0xb80   :  { %2164 = vpow2.f32 %v1629_v49  ;;  %v1620_v57 = vmul.f32 0.5, %v2631_v16  ;;  %1697 = vrot.lane.b32.xlu1 %v2631_v16, %s2187_s16 }
 0xb81   :  { %v1619_v20 = vmul.f32 0.5, %v2633_v18  ;;  %1695 = vrot.lane.b32.xlu0 %v2633_v18, %s2187_s16  ;;  %v2057_v21 = vpop.f32.mrb[26].mxu0  ;;  %v2161_v24 = vpop.eup %2160  ;;  %2166 = vpow2.f32 %v1627_v56 }
 0xb82   :  { %v2641_v22 = vadd.f32 %v2057_v21, %v1840_v50  ;;  %v1606_v23 = vpop.f32.mrb[27].mxu0  ;;  %v2163_v29 = vpop.eup %2162  ;;  %v1633_v15 = vmul.f32 1.442695, %v1620_v57 }
 0xb83   :  { %v1631_v27 = vmul.f32 1.442695, %v1619_v20  ;;  %v2643_v1 = vadd.f32 %v1840_v50, %v1606_v23  ;;  %v2180_v50 = vld [vmem:[%s2731_s0 + $0x20] sm:$0xff] }
 0xb84   :  { %v1622_v30 = vmul.f32 0.5, %v2641_v22  ;;  %1647 = vrot.lane.b32.xlu1 %v2161_v24, %s2188_s1 }
 0xb85   :  { %2168 = vpow2.f32 %v1631_v27  ;;  %v1621_v48 = vmul.f32 0.5, %v2643_v1  ;;  %1649 = vrot.lane.b32.xlu0 %v2163_v29, %s2188_s1 }
 0xb86   :  { %2170 = vpow2.f32 %v1633_v15  ;;  %v1637_v34 = vmul.f32 1.442695, %v1622_v30 }
 0xb87   :  { %v1635_v31 = vmul.f32 1.442695, %v1621_v48 }
 0xb89   :  { %2172 = vpow2.f32 %v1635_v31 }
 0xb8a   :  { %v2165_v35 = vpop.eup %2164  ;;  %2174 = vpow2.f32 %v1637_v34 }
 0xb8b   :  { %1653 = vrot.lane.b32.xlu1 %v2165_v35, %s2188_s1  ;;  %v2167_v36 = vpop.eup %2166 }
 0xb8f   :  { %v2169_v28 = vpop.eup %2168  ;;  %1651 = vrot.lane.b32.xlu1 %v2167_v36, %s2188_s1 }
 0xb90   :  { %1655 = vrot.lane.b32.xlu0 %v2169_v28, %s2188_s1  ;;  %v2171_v37 = vpop.eup %2170 }
 0xb93   :  { %v2173_v38 = vpop.eup %2172  ;;  %1657 = vrot.lane.b32.xlu1 %v2171_v37, %s2188_s1 }
 0xb94   :  { %1659 = vrot.lane.b32.xlu0 %v2173_v38, %s2188_s1  ;;  %v2175_v41 = vpop.eup %2174 }
 0xb97   :  { %1661 = vrot.lane.b32.xlu1 %v2175_v41, %s2188_s1 }
 0xb98   :  { %1699 = vrot.lane.b32.xlu0 %v2643_v1, %s2187_s16 }
 0xb9b   :  { %1701 = vrot.lane.b32.xlu1 %v2641_v22, %s2187_s16 }
 0xbe4   :  { %v1690_v0 = vpop.permute.xlu1 %1689 }
 0xbe5   :  { %v1688_v43 = vpop.permute.xlu0 %1687 }
 0xbee   :  { %v1694_v44 = vpop.permute.xlu1 %1693 }
 0xbef   :  { %v1692_v45 = vpop.permute.xlu0 %1691 }
 0xbf2   :  { %v1698_v46 = vpop.permute.xlu1 %1697 }
 0xbf3   :  { %v1696_v25 = vpop.permute.xlu0 %1695 }
 0xbf6   :  { %v1648_v26 = vpop.permute.xlu1 %1647 }
 0xbf7   :  { %v1671_v6 = vmul.f32 %v2176_v51, %v1648_v26  ;;  %v1650_v32 = vpop.permute.xlu0 %1649 }
 0xbf8   :  { %v1672_v53 = vmul.f32 %v2177_v52, %v1650_v32 }
 0xbf9   :  { %v1711_v39 = vadd.f32 %v1688_v43, %v1671_v6 }
 0xbfa   :  { %v1712_v55 = vadd.f32 %v1690_v0, %v1672_v53 }
 0xbfb   :  { %1727 = vrot.lane.b32.xlu0 %v1711_v39, %s2189_s21 }
 0xbfc   :  { %1729 = vrot.lane.b32.xlu1 %v1712_v55, %s2189_s21 }
 0xbfd   :  { %v1654_v33 = vpop.permute.xlu1 %1653 }
 0xbfe   :  { %v1674_v59 = vmul.f32 %v2178_v58, %v1654_v33 }
 0xc00   :  { %v1714_v19 = vadd.f32 %v1694_v44, %v1674_v59 }
 0xc01   :  { %v1652_v40 = vpop.permute.xlu1 %1651 }
 0xc02   :  { %v1673_v61 = vmul.f32 %v2179_v60, %v1652_v40  ;;  %v1656_v62 = vpop.permute.xlu0 %1655  ;;  %1733 = vrot.lane.b32.xlu1 %v1714_v19, %s2189_s21 }
 0xc03   :  { %v1675_v63 = vmul.f32 %v2180_v50, %v1656_v62 }
 0xc04   :  { %v1713_v47 = vadd.f32 %v1692_v45, %v1673_v61 }
 0xc05   :  { %v1658_v3 = vpop.permute.xlu1 %1657  ;;  %v1715_v8 = vadd.f32 %v1696_v25, %v1675_v63 }
 0xc06   :  { %v1676_v5 = vmul.f32 %v2181_v54, %v1658_v3  ;;  %v1660_v7 = vpop.permute.xlu0 %1659  ;;  %1731 = vrot.lane.b32.xlu0 %v1713_v47, %s2189_s21 }
 0xc07   :  { %v1677_v12 = vmul.f32 %v2182_v42, %v1660_v7 }
 0xc08   :  { %v1716_v9 = vadd.f32 %v1698_v46, %v1676_v5 }
 0xc09   :  { %v1662_v13 = vpop.permute.xlu1 %1661 }
 0xc0a   :  { %v1700_v14 = vpop.permute.xlu0 %1699  ;;  %1735 = vrot.lane.b32.xlu0 %v1715_v8, %s2189_s21  ;;  %1737 = vrot.lane.b32.xlu1 %v1716_v9, %s2189_s21  ;;  %v1678_v56 = vmul.f32 %v2183_v17, %v1662_v13 }
 0xc0b   :  { %v1717_v49 = vadd.f32 %v1700_v14, %v1677_v12 }
 0xc0d   :  { %v1702_v57 = vpop.permute.xlu1 %1701 }
 0xc0e   :  { %v1718_v20 = vadd.f32 %v1702_v57, %v1678_v56  ;;  %1739 = vrot.lane.b32.xlu0 %v1717_v49, %s2189_s21 }
 0xc10   :  { %1741 = vrot.lane.b32.xlu1 %v1718_v20, %s2189_s21 }
 0xc6d   :  { %v1728_v21 = vpop.permute.xlu0 %1727 }
 0xc6e   :  { %v1751_v23 = vsel %vm438_vm1, %v2613_v4, %v1728_v21  ;;  %v1730_v24 = vpop.permute.xlu1 %1729 }
 0xc6f   :  { %v1760_v27 = vsel %vm1759_vm3, %v1751_v23, 0.0  ;;  %v1752_v29 = vsel %vm438_vm1, %v2611_v2, %v1730_v24 }
 0xc70   :  { %1768 = vst [vmem:[%s2733_s2] sm:$0xff] %v1760_v27  ;;  %v1761_v15 = vsel %vm1759_vm3, %v1752_v29, 0.0 }
 0xc71   :  { %1769 = vst [vmem:[%s2733_s2 + $0x8] sm:$0xff] %v1761_v15 }
 0xc74   :  { %v1734_v30 = vpop.permute.xlu1 %1733 }
 0xc75   :  { %v1754_v4 = vsel %vm438_vm1, %v2621_v10, %v1734_v30 }
 0xc76   :  { %v1763_v48 = vsel %vm1759_vm3, %v1754_v4, 0.0 }
 0xc77   :  { %1771 = vst [vmem:[%s2733_s2 + $0x18] sm:$0xff] %v1763_v48 }
 0xc78   :  { %v1732_v2 = vpop.permute.xlu0 %1731 }
 0xc79   :  { %v1753_v31 = vsel %vm438_vm1, %v2623_v11, %v1732_v2 }
 0xc7a   :  { %v1762_v34 = vsel %vm1759_vm3, %v1753_v31, 0.0 }
 0xc7b   :  { %1770 = vst [vmem:[%s2733_s2 + $0x10] sm:$0xff] %v1762_v34 }
 0xc7c   :  { %v1736_v35 = vpop.permute.xlu0 %1735  ;;  %v1738_v36 = vpop.permute.xlu1 %1737 }
 0xc7d   :  { %v1755_v10 = vsel %vm438_vm1, %v2633_v18, %v1736_v35  ;;  %v1756_v28 = vsel %vm438_vm1, %v2631_v16, %v1738_v36 }
 0xc7e   :  { %v1764_v37 = vsel %vm1759_vm3, %v1755_v10, 0.0  ;;  %v1765_v38 = vsel %vm1759_vm3, %v1756_v28, 0.0 }
 0xc7f   :  { %1772 = vst [vmem:[%s2733_s2 + $0x20] sm:$0xff] %v1764_v37  ;;  %1773 = vst [vmem:[%s2733_s2 + $0x28] sm:$0xff] %v1765_v38 }
 0xc80   :  { %v1740_v11 = vpop.permute.xlu0 %1739 }
 0xc81   :  { %v1757_v41 = vsel %vm438_vm1, %v2643_v1, %v1740_v11 }
 0xc82   :  { %v1766_v18 = vsel %vm1759_vm3, %v1757_v41, 0.0  ;;  %v1742_v0 = vpop.permute.xlu1 %1741 }
 0xc83   :  { %1774 = vst [vmem:[%s2733_s2 + $0x30] sm:$0xff] %v1766_v18  ;;  %v1758_v16 = vsel %vm438_vm1, %v2641_v22, %v1742_v0 }
 0xc84   :  { %v1767_v43 = vsel %vm1759_vm3, %v1758_v16, 0.0 }
 0xc85   :  { %1775 = vst [vmem:[%s2733_s2 + $0x38] sm:$0xff] %v1767_v43 }

</bundles_post_ra>
